<compile_context>
chip_gen: v6e
topology: v6e:2x2x1
jax: 0.10.0
libtpu: 0.0.40
codegen_flags: <defaults>
</compile_context>

<pallas_src>
import jax
import jax.numpy as jnp
from jax.experimental import pallas as pl
from jax.experimental.pallas import tpu as pltpu

# Branch order used everywhere (adj stack, weight stacks, output lane blocks).
BRANCH_ORDER = ("A1", "A2", "P1", "P2")
NB = len(BRANCH_ORDER)


def _round_up(a, m):
    return ((a + m - 1) // m) * m


def _log_softmax_rows(v):
    m = jnp.max(v, axis=-1, keepdims=True)
    s = v - m
    return s - jnp.log(jnp.sum(jnp.exp(s), axis=-1, keepdims=True))


# ---------------------------------------------------------------------------
# Fused kernel: grid = (stage = GC layer, row tile)
# ---------------------------------------------------------------------------

def make_kernel(*, nlayer, nclass, tile_m, out_w):
    C = nclass

    def kernel(adj_ref, x_ref, *rest):
        # rest = [w_0, b_0, ..., w_{L-1}, b_{L-1}, lin_w, lin_b, o_ref, h_scratch]
        gc_refs = rest[: 2 * nlayer]
        lin_w_ref, lin_b_ref, o_ref, h_ref = rest[2 * nlayer:]

        s = pl.program_id(0)                       # GC layer index (sequential)
        i = pl.program_id(1)                       # row tile index
        row0 = pl.multiple_of(i * tile_m, tile_m)

        for l in range(nlayer):                    # static unroll; one branch live
            @pl.when(s == l)
            def _(l=l):
                w_ref = gc_refs[2 * l]             # [4, fin, HPAD]  bf16
                b_ref = gc_refs[2 * l + 1]         # [4, 1, HPAD]    f32
                wslot = l & 1
                rslot = (l - 1) & 1
                acts = []
                for b in range(NB):
                    adj_tile = adj_ref[b]                          # [TM, NP] bf16
                    src = x_ref[...] if l == 0 else h_ref[rslot, b]  # [NP, fin] bf16
                    # (adj @ h) @ w  ==  adj @ (h @ w): row-tile friendly order.
                    mixed = jnp.dot(adj_tile, src,
                                    preferred_element_type=jnp.float32)
                    pre = jnp.dot(mixed.astype(jnp.bfloat16), w_ref[b],
                                  preferred_element_type=jnp.float32)
                    act = jnp.tanh(pre + b_ref[b])                 # [TM, HPAD] f32
                    act_bf = act.astype(jnp.bfloat16)
                    h_ref[wslot, b, pl.ds(row0, tile_m), :] = act_bf
                    if l == nlayer - 1:
                        acts.append(act_bf)
                    # F.dropout(training=False) is the identity (eval mode).

                if l == nlayer - 1:
                    # Per-branch Linear with the fusion Linear folded in at pack
                    # time; single accumulation over branches produces
                    # [x_A1 | x_A2 | x_P1 | x_P2 | fused | 0-pad].
                    tot = lin_b_ref[...]                           # [1, OUT_W] f32
                    for b in range(NB):
                        tot = tot + jnp.dot(acts[b], lin_w_ref[b],
                                            preferred_element_type=jnp.float32)
                    rows = pl.ds(row0, tile_m)
                    # Output slab layout: [ls(fused) | ls(P1) | ls(P2) | x_A1 | 0].
                    o_ref[rows, 0:C]       = _log_softmax_rows(tot[:, 4 * C:5 * C])
                    o_ref[rows, C:2 * C]   = _log_softmax_rows(tot[:, 2 * C:3 * C])
                    o_ref[rows, 2 * C:3 * C] = _log_softmax_rows(tot[:, 3 * C:4 * C])
                    o_ref[rows, 3 * C:4 * C] = tot[:, 0:C]
                    o_ref[rows, 4 * C:out_w] = jnp.zeros(
                        (tile_m, out_w - 4 * C), jnp.float32)

    return kernel


# ---------------------------------------------------------------------------
# Wrapper
# ---------------------------------------------------------------------------

def gcn_plus_forward(packed, x, A1, P1, A2, P2):
    nclass = packed["nclass"]
    nlayer = packed["nlayer"]
    nfeat = packed["nfeat"]
    hpad = packed["hpad"]
    out_w = packed["out_w"]
    C = nclass

    N = x.shape[0]
    tile_m = min(256, _round_up(N, 16))
    np_ = _round_up(N, tile_m)
    num_tiles = np_ // tile_m

    # Zero-pad rows to a multiple of the row tile; padded rows cannot
    # contaminate real rows because their adjacency *columns* are zero.
    x_p = jnp.zeros((np_, nfeat), jnp.bfloat16).at[:N].set(x.astype(jnp.bfloat16))
    adj = jnp.zeros((NB, np_, np_), jnp.bfloat16)
    for b, a in enumerate((A1, A2, P1, P2)):          # matches BRANCH_ORDER
        adj = adj.at[b, :N, :N].set(a.astype(jnp.bfloat16))

    args = [adj, x_p, *packed["gc"], packed["lin_w"], packed["lin_b"]]

    def full_spec(arr):
        return pl.BlockSpec(arr.shape, lambda s, i, _nd=arr.ndim: (0,) * _nd)

    in_specs = [pl.BlockSpec((NB, tile_m, np_), lambda s, i: (0, i, 0))]
    in_specs += [full_spec(a) for a in args[1:]]
    out_specs = pl.BlockSpec((np_, out_w), lambda s, i: (0, 0))

    # ---- VMEM budget + cost estimate -------------------------------------
    def nbytes(a):
        return int(a.size) * a.dtype.itemsize

    weight_bytes = sum(nbytes(a) for a in args[2:])
    adj_tile_bytes = NB * tile_m * np_ * 2
    work = (3 * adj_tile_bytes                         # pipelined adj tiles
            + nbytes(x_p)
            + 2 * NB * np_ * hpad * 2                  # ping-pong activations
            + weight_bytes
            + np_ * out_w * 4
            + (2 << 20))
    vmem_limit = int(min(max(work * 3 // 2, 16 << 20), 64 << 20))

    flops = 0
    for l in range(nlayer):
        fin = nfeat if l == 0 else hpad
        flops += NB * (2 * np_ * np_ * fin + 2 * np_ * fin * hpad)
    flops += NB * 2 * np_ * hpad * out_w
    transc = nlayer * NB * np_ * hpad + 3 * np_ * nclass
    bytes_acc = (nlayer * NB * np_ * np_ * 2 + nbytes(x_p) + weight_bytes
                 + np_ * out_w * 4)

    kernel = make_kernel(nlayer=nlayer, nclass=nclass, tile_m=tile_m, out_w=out_w)
    out = pl.pallas_call(
        kernel,
        out_shape=jax.ShapeDtypeStruct((np_, out_w), jnp.float32),
        grid=(nlayer, num_tiles),
        in_specs=in_specs,
        out_specs=out_specs,
        scratch_shapes=[pltpu.VMEM((2, NB, np_, hpad), jnp.bfloat16)],
        compiler_params=pltpu.CompilerParams(
            # Row-tile axis must be sequential: stage s+1 reads the activation
            # of *all* row tiles of stage s through the shared VMEM scratch.
            dimension_semantics=("arbitrary", "arbitrary"),
            vmem_limit_bytes=vmem_limit),
        cost_estimate=pl.CostEstimate(flops=int(flops),
                                      transcendentals=int(transc),
                                      bytes_accessed=int(bytes_acc)),
    )(*args)

    return (out[:N, 0:C], out[:N, C:2 * C], out[:N, 2 * C:3 * C],
            out[:N, 3 * C:4 * C])


# ---------------------------------------------------------------------------
# Parameters: PyTorch-shaped init + one-time packing into the fused layout
# ---------------------------------------------------------------------------

def init_params(key, nfeat, nhid, nclass, nlayer):
    def uniform(k, shape, bound):
        return jax.random.uniform(k, shape, jnp.float32, -bound, bound)

    params = {}
    for branch in BRANCH_ORDER:
        layers = []
        for i in range(nlayer):
            fin = nfeat if i == 0 else nhid
            key, kw, kb = jax.random.split(key, 3)
            bound = 1.0 / jnp.sqrt(nhid)
            layers.append((uniform(kw, (fin, nhid), bound),     # GC weight [in,out]
                           uniform(kb, (nhid,), bound)))        # GC bias
        params[f"gc_{branch}"] = layers

        key, kw, kb = jax.random.split(key, 3)
        bound = 1.0 / jnp.sqrt(nhid)
        params[f"lin_{branch}"] = (uniform(kw, (nclass, nhid), bound),  # nn.Linear [out,in]
                                   uniform(kb, (nclass,), bound))

    key, kw, kb = jax.random.split(key, 3)
    bound = 1.0 / jnp.sqrt(nclass * 2)
    params["lin_fusion"] = (uniform(kw, (nclass, nclass * 2), bound),
                            uniform(kb, (nclass,), bound))
    return params


def pack_params(params, nfeat, nhid, nclass, nlayer):
    """One-time packing: branch-stacked, lane-padded, bf16 weights; fusion folded."""
    hpad = _round_up(nhid, 128)
    out_w = _round_up(5 * nclass, 128)
    C = nclass

    def pad2(w, rows, cols):
        return jnp.zeros((rows, cols), jnp.float32).at[:w.shape[0], :w.shape[1]].set(w)

    gc = []
    for l in range(nlayer):
        fin = nfeat if l == 0 else hpad
        ws, bs = [], []
        for b in BRANCH_ORDER:
            w, bias = params[f"gc_{b}"][l]                      # [fin_raw,nhid],[nhid]
            ws.append(pad2(w, fin, hpad))
            bs.append(pad2(bias.reshape(1, -1), 1, hpad))
        gc.append(jnp.stack(ws).astype(jnp.bfloat16))           # [4, fin, HPAD]
        gc.append(jnp.stack(bs))                                # [4, 1, HPAD] f32

    # Per-branch Linear (pre-transposed) with the fusion Linear folded in:
    # fused = x_A1 @ Wf.T[:C] + x_A2 @ Wf.T[C:2C] + bf
    wf, bf = params["lin_fusion"]                               # [C,2C], [C]
    wfT = wf.T                                                  # [2C, C]
    lin_ws = []
    lin_b = jnp.zeros((1, out_w), jnp.float32)
    for bi, b in enumerate(BRANCH_ORDER):
        w, bias = params[f"lin_{b}"]                            # [C, nhid], [C]
        blk = jnp.zeros((hpad, out_w), jnp.float32)
        blk = blk.at[:nhid, bi * C:(bi + 1) * C].set(w.T)
        lin_b = lin_b.at[0, bi * C:(bi + 1) * C].set(bias)
        if b == "A1":
            blk = blk.at[:nhid, 4 * C:5 * C].set(w.T @ wfT[0:C, :])
            lin_b = lin_b.at[0, 4 * C:5 * C].add(bias @ wfT[0:C, :])
        elif b == "A2":
            blk = blk.at[:nhid, 4 * C:5 * C].set(w.T @ wfT[C:2 * C, :])
            lin_b = lin_b.at[0, 4 * C:5 * C].add(bias @ wfT[C:2 * C, :])
        lin_ws.append(blk)
    lin_b = lin_b.at[0, 4 * C:5 * C].add(bf)
    lin_w = jnp.stack(lin_ws).astype(jnp.bfloat16)              # [4, HPAD, OUT_W]

    return {"gc": gc, "lin_w": lin_w, "lin_b": lin_b,
            "nfeat": nfeat, "nhid": nhid, "nclass": nclass, "nlayer": nlayer,
            "hpad": hpad, "out_w": out_w}


# ---------------------------------------------------------------------------
# Pure-JAX reference (mirrors the PyTorch forward in eval mode, f32)
# ---------------------------------------------------------------------------

def reference_forward(params, x, A1, P1, A2, P2):
    def branch(x_in, adj, layers):
        h = x_in
        for (w, b) in layers:
            h = jnp.tanh(adj @ (h @ w) + b)
        return h

    def lin(h, w, b):
        return h @ w.T + b

    x_A1 = lin(branch(x, A1, params["gc_A1"]), *params["lin_A1"])
    x_P1 = lin(branch(x, P1, params["gc_P1"]), *params["lin_P1"])
    x_A2 = lin(branch(x, A2, params["gc_A2"]), *params["lin_A2"])
    x_P2 = lin(branch(x, P2, params["gc_P2"]), *params["lin_P2"])
    fused = lin(jnp.concatenate([x_A1, x_A2], axis=1), *params["lin_fusion"])
    lsm = lambda v: jax.nn.log_softmax(v, axis=1)
    return lsm(fused), lsm(x_P1), lsm(x_P2), x_A1


# ---------------------------------------------------------------------------
# Main
# ---------------------------------------------------------------------------

if __name__ == "__main__":
    N, nfeat, nhid, nclass, nlayer = 16, 32, 32, 8, 2
    dropout = 0.5  # unused in eval mode

    key = jax.random.PRNGKey(0)
    key, kx, ka1, kp1, ka2, kp2, kparam = jax.random.split(key, 7)

    x = jax.random.normal(kx, (N, nfeat), jnp.float32)

    def make_adj(k):
        a = jax.random.uniform(k, (N, N), jnp.float32)
        a = (a + a.T) * 0.5 + jnp.eye(N, dtype=jnp.float32)
        deg = jnp.sum(a, axis=1, keepdims=True)
        return a / deg  # row-normalized adjacency

    A1 = make_adj(ka1)
    P1 = make_adj(kp1)
    A2 = make_adj(ka2)
    P2 = make_adj(kp2)

    params = init_params(kparam, nfeat, nhid, nclass, nlayer)
    packed = pack_params(params, nfeat, nhid, nclass, nlayer)

    fwd = jax.jit(lambda x, A1, P1, A2, P2:
                  gcn_plus_forward(packed, x, A1, P1, A2, P2))

    outs = fwd(x, A1, P1, A2, P2)
    outs = jax.block_until_ready(outs)

    ls_fused, ls_p1, ls_p2, xa1 = outs
    assert ls_fused.shape == (N, nclass)
    assert ls_p1.shape == (N, nclass)
    assert ls_p2.shape == (N, nclass)
    assert xa1.shape == (N, nclass)

    # Correctness vs. f32 reference (kernel uses bf16 MXU inputs -> looser tol).
    refs = reference_forward(params, x, A1, P1, A2, P2)
    for got, want in zip(outs, refs):
        assert got.shape == want.shape
        err = float(jnp.max(jnp.abs(got - want)))
        assert jnp.allclose(got, want, atol=5e-2, rtol=5e-2), err

    # log_softmax rows should sum (after exp) to 1.
    assert jnp.allclose(jnp.sum(jnp.exp(ls_fused), axis=1), 1.0, atol=1e-3)
    assert jnp.allclose(jnp.sum(jnp.exp(ls_p1), axis=1), 1.0, atol=1e-3)

    print("KERNEL_OK")
</pallas_src>

<mosaic_0001>
module attributes {stable_mosaic.version = 11 : i64} {
  func.func @kernel(%arg0: i32, %arg1: i32, %arg2: memref<4x16x16xbf16, #tpu.memory_space<vmem>>, %arg3: memref<16x32xbf16, #tpu.memory_space<vmem>>, %arg4: memref<4x32x128xbf16, #tpu.memory_space<vmem>>, %arg5: memref<4x1x128xf32, #tpu.memory_space<vmem>>, %arg6: memref<4x128x128xbf16, #tpu.memory_space<vmem>>, %arg7: memref<4x1x128xf32, #tpu.memory_space<vmem>>, %arg8: memref<4x128x128xbf16, #tpu.memory_space<vmem>>, %arg9: memref<1x128xf32, #tpu.memory_space<vmem>>, %arg10: memref<16x128xf32, #tpu.memory_space<vmem>>, %arg11: memref<2x4x16x128xbf16, #tpu.memory_space<vmem>>) attributes {dimension_semantics = [#tpu.dimension_semantics<arbitrary>, #tpu.dimension_semantics<arbitrary>], iteration_bounds = array<i64: 2, 1>, scalar_prefetch = 0 : i64, scratch_operands = 1 : i64, tpu.core_type = #tpu.core_type<tc>, window_params = [{transform_indices = @transform_0, window_bounds = array<i64: 4, 16, 16>}, {pipeline_mode = #tpu.pipeline_mode<synchronous>, transform_indices = @transform_1, window_bounds = array<i64: 16, 32>}, {pipeline_mode = #tpu.pipeline_mode<synchronous>, transform_indices = @transform_2, window_bounds = array<i64: 4, 32, 128>}, {pipeline_mode = #tpu.pipeline_mode<synchronous>, transform_indices = @transform_3, window_bounds = array<i64: 4, 1, 128>}, {pipeline_mode = #tpu.pipeline_mode<synchronous>, transform_indices = @transform_4, window_bounds = array<i64: 4, 128, 128>}, {pipeline_mode = #tpu.pipeline_mode<synchronous>, transform_indices = @transform_5, window_bounds = array<i64: 4, 1, 128>}, {pipeline_mode = #tpu.pipeline_mode<synchronous>, transform_indices = @transform_6, window_bounds = array<i64: 4, 128, 128>}, {pipeline_mode = #tpu.pipeline_mode<synchronous>, transform_indices = @transform_7, window_bounds = array<i64: 1, 128>}, {pipeline_mode = #tpu.pipeline_mode<synchronous>, transform_indices = @transform_8, window_bounds = array<i64: 16, 128>}]} {
    %c16_i32 = arith.constant 16 : i32
    %0 = arith.muli %arg1, %c16_i32 : i32
    %1 = tpu.assume_multiple %0, 16 : i32
    %c0_i32 = arith.constant 0 : i32
    %2 = arith.cmpi eq, %arg0, %c0_i32 : i32
    %3 = arith.extui %2 : i1 to i32
    %c0_i32_0 = arith.constant 0 : i32
    %4 = arith.cmpi ne, %3, %c0_i32_0 : i32
    scf.if %4 {
      %c0 = arith.constant 0 : index
      %c0_2 = arith.constant 0 : index
      %c0_3 = arith.constant 0 : index
      %8 = vector.load %arg2[%c0, %c0_2, %c0_3] : memref<4x16x16xbf16, #tpu.memory_space<vmem>>, vector<1x16x16xbf16>
      %9 = vector.shape_cast %8 : vector<1x16x16xbf16> to vector<16x16xbf16>
      %c0_4 = arith.constant 0 : index
      %c0_5 = arith.constant 0 : index
      %10 = vector.load %arg3[%c0_4, %c0_5] : memref<16x32xbf16, #tpu.memory_space<vmem>>, vector<16x32xbf16>
      %cst = arith.constant dense<0.000000e+00> : vector<16x32xf32>
      %11 = tpu.matmul %9, %10, %cst {dimension_numbers = #tpu.dot_dimension_numbers<[1], [0], [0], [1], [0, 0, 1, 1], [], []>} : vector<16x16xbf16>, vector<16x32xbf16>, vector<16x32xf32> -> vector<16x32xf32>
      %12 = arith.truncf %11 : vector<16x32xf32> to vector<16x32xbf16>
      %c0_6 = arith.constant 0 : index
      %c0_7 = arith.constant 0 : index
      %c0_8 = arith.constant 0 : index
      %13 = vector.load %arg4[%c0_6, %c0_7, %c0_8] : memref<4x32x128xbf16, #tpu.memory_space<vmem>>, vector<1x32x128xbf16>
      %14 = vector.shape_cast %13 : vector<1x32x128xbf16> to vector<32x128xbf16>
      %cst_9 = arith.constant dense<0.000000e+00> : vector<16x128xf32>
      %15 = tpu.matmul %12, %14, %cst_9 {dimension_numbers = #tpu.dot_dimension_numbers<[1], [0], [0], [1], [0, 0, 1, 1], [], []>} : vector<16x32xbf16>, vector<32x128xbf16>, vector<16x128xf32> -> vector<16x128xf32>
      %c0_10 = arith.constant 0 : index
      %c0_11 = arith.constant 0 : index
      %c0_12 = arith.constant 0 : index
      %16 = vector.load %arg5[%c0_10, %c0_11, %c0_12] : memref<4x1x128xf32, #tpu.memory_space<vmem>>, vector<1x1x128xf32>
      %17 = vector.shape_cast %16 : vector<1x1x128xf32> to vector<1x128xf32>
      %18 = vector.broadcast %17 : vector<1x128xf32> to vector<16x128xf32>
      %19 = arith.addf %15, %18 : vector<16x128xf32>
      %20 = math.tanh %19 : vector<16x128xf32>
      %21 = arith.truncf %20 : vector<16x128xf32> to vector<16x128xbf16>
      %c0_13 = arith.constant 0 : index
      %c0_14 = arith.constant 0 : index
      %22 = arith.index_cast %1 : i32 to index
      %c0_15 = arith.constant 0 : index
      %23 = vector.load %arg11[%c0_13, %c0_14, %22, %c0_15] : memref<2x4x16x128xbf16, #tpu.memory_space<vmem>>, vector<1x1x16x128xbf16>
      %24 = vector.shape_cast %23 : vector<1x1x16x128xbf16> to vector<16x128xbf16>
      %25 = vector.shape_cast %21 : vector<16x128xbf16> to vector<1x1x16x128xbf16>
      tpu.vector_store %arg11[%c0_13, %c0_14, %22, %c0_15], %25 {strides = array<i32>} : memref<2x4x16x128xbf16, #tpu.memory_space<vmem>>, vector<1x1x16x128xbf16>,
      %c1 = arith.constant 1 : index
      %c0_16 = arith.constant 0 : index
      %c0_17 = arith.constant 0 : index
      %26 = vector.load %arg2[%c1, %c0_16, %c0_17] : memref<4x16x16xbf16, #tpu.memory_space<vmem>>, vector<1x16x16xbf16>
      %27 = vector.shape_cast %26 : vector<1x16x16xbf16> to vector<16x16xbf16>
      %c0_18 = arith.constant 0 : index
      %c0_19 = arith.constant 0 : index
      %28 = vector.load %arg3[%c0_18, %c0_19] : memref<16x32xbf16, #tpu.memory_space<vmem>>, vector<16x32xbf16>
      %cst_20 = arith.constant dense<0.000000e+00> : vector<16x32xf32>
      %29 = tpu.matmul %27, %28, %cst_20 {dimension_numbers = #tpu.dot_dimension_numbers<[1], [0], [0], [1], [0, 0, 1, 1], [], []>} : vector<16x16xbf16>, vector<16x32xbf16>, vector<16x32xf32> -> vector<16x32xf32>
      %30 = arith.truncf %29 : vector<16x32xf32> to vector<16x32xbf16>
      %c1_21 = arith.constant 1 : index
      %c0_22 = arith.constant 0 : index
      %c0_23 = arith.constant 0 : index
      %31 = vector.load %arg4[%c1_21, %c0_22, %c0_23] : memref<4x32x128xbf16, #tpu.memory_space<vmem>>, vector<1x32x128xbf16>
      %32 = vector.shape_cast %31 : vector<1x32x128xbf16> to vector<32x128xbf16>
      %cst_24 = arith.constant dense<0.000000e+00> : vector<16x128xf32>
      %33 = tpu.matmul %30, %32, %cst_24 {dimension_numbers = #tpu.dot_dimension_numbers<[1], [0], [0], [1], [0, 0, 1, 1], [], []>} : vector<16x32xbf16>, vector<32x128xbf16>, vector<16x128xf32> -> vector<16x128xf32>
      %c1_25 = arith.constant 1 : index
      %c0_26 = arith.constant 0 : index
      %c0_27 = arith.constant 0 : index
      %34 = vector.load %arg5[%c1_25, %c0_26, %c0_27] : memref<4x1x128xf32, #tpu.memory_space<vmem>>, vector<1x1x128xf32>
      %35 = vector.shape_cast %34 : vector<1x1x128xf32> to vector<1x128xf32>
      %36 = vector.broadcast %35 : vector<1x128xf32> to vector<16x128xf32>
      %37 = arith.addf %33, %36 : vector<16x128xf32>
      %38 = math.tanh %37 : vector<16x128xf32>
      %39 = arith.truncf %38 : vector<16x128xf32> to vector<16x128xbf16>
      %c0_28 = arith.constant 0 : index
      %c1_29 = arith.constant 1 : index
      %40 = arith.index_cast %1 : i32 to index
      %c0_30 = arith.constant 0 : index
      %41 = vector.load %arg11[%c0_28, %c1_29, %40, %c0_30] : memref<2x4x16x128xbf16, #tpu.memory_space<vmem>>, vector<1x1x16x128xbf16>
      %42 = vector.shape_cast %41 : vector<1x1x16x128xbf16> to vector<16x128xbf16>
      %43 = vector.shape_cast %39 : vector<16x128xbf16> to vector<1x1x16x128xbf16>
      tpu.vector_store %arg11[%c0_28, %c1_29, %40, %c0_30], %43 {strides = array<i32>} : memref<2x4x16x128xbf16, #tpu.memory_space<vmem>>, vector<1x1x16x128xbf16>,
      %c2 = arith.constant 2 : index
      %c0_31 = arith.constant 0 : index
      %c0_32 = arith.constant 0 : index
      %44 = vector.load %arg2[%c2, %c0_31, %c0_32] : memref<4x16x16xbf16, #tpu.memory_space<vmem>>, vector<1x16x16xbf16>
      %45 = vector.shape_cast %44 : vector<1x16x16xbf16> to vector<16x16xbf16>
      %c0_33 = arith.constant 0 : index
      %c0_34 = arith.constant 0 : index
      %46 = vector.load %arg3[%c0_33, %c0_34] : memref<16x32xbf16, #tpu.memory_space<vmem>>, vector<16x32xbf16>
      %cst_35 = arith.constant dense<0.000000e+00> : vector<16x32xf32>
      %47 = tpu.matmul %45, %46, %cst_35 {dimension_numbers = #tpu.dot_dimension_numbers<[1], [0], [0], [1], [0, 0, 1, 1], [], []>} : vector<16x16xbf16>, vector<16x32xbf16>, vector<16x32xf32> -> vector<16x32xf32>
      %48 = arith.truncf %47 : vector<16x32xf32> to vector<16x32xbf16>
      %c2_36 = arith.constant 2 : index
      %c0_37 = arith.constant 0 : index
      %c0_38 = arith.constant 0 : index
      %49 = vector.load %arg4[%c2_36, %c0_37, %c0_38] : memref<4x32x128xbf16, #tpu.memory_space<vmem>>, vector<1x32x128xbf16>
      %50 = vector.shape_cast %49 : vector<1x32x128xbf16> to vector<32x128xbf16>
      %cst_39 = arith.constant dense<0.000000e+00> : vector<16x128xf32>
      %51 = tpu.matmul %48, %50, %cst_39 {dimension_numbers = #tpu.dot_dimension_numbers<[1], [0], [0], [1], [0, 0, 1, 1], [], []>} : vector<16x32xbf16>, vector<32x128xbf16>, vector<16x128xf32> -> vector<16x128xf32>
      %c2_40 = arith.constant 2 : index
      %c0_41 = arith.constant 0 : index
      %c0_42 = arith.constant 0 : index
      %52 = vector.load %arg5[%c2_40, %c0_41, %c0_42] : memref<4x1x128xf32, #tpu.memory_space<vmem>>, vector<1x1x128xf32>
      %53 = vector.shape_cast %52 : vector<1x1x128xf32> to vector<1x128xf32>
      %54 = vector.broadcast %53 : vector<1x128xf32> to vector<16x128xf32>
      %55 = arith.addf %51, %54 : vector<16x128xf32>
      %56 = math.tanh %55 : vector<16x128xf32>
      %57 = arith.truncf %56 : vector<16x128xf32> to vector<16x128xbf16>
      %c0_43 = arith.constant 0 : index
      %c2_44 = arith.constant 2 : index
      %58 = arith.index_cast %1 : i32 to index
      %c0_45 = arith.constant 0 : index
      %59 = vector.load %arg11[%c0_43, %c2_44, %58, %c0_45] : memref<2x4x16x128xbf16, #tpu.memory_space<vmem>>, vector<1x1x16x128xbf16>
      %60 = vector.shape_cast %59 : vector<1x1x16x128xbf16> to vector<16x128xbf16>
      %61 = vector.shape_cast %57 : vector<16x128xbf16> to vector<1x1x16x128xbf16>
      tpu.vector_store %arg11[%c0_43, %c2_44, %58, %c0_45], %61 {strides = array<i32>} : memref<2x4x16x128xbf16, #tpu.memory_space<vmem>>, vector<1x1x16x128xbf16>,
      %c3 = arith.constant 3 : index
      %c0_46 = arith.constant 0 : index
      %c0_47 = arith.constant 0 : index
      %62 = vector.load %arg2[%c3, %c0_46, %c0_47] : memref<4x16x16xbf16, #tpu.memory_space<vmem>>, vector<1x16x16xbf16>
      %63 = vector.shape_cast %62 : vector<1x16x16xbf16> to vector<16x16xbf16>
      %c0_48 = arith.constant 0 : index
      %c0_49 = arith.constant 0 : index
      %64 = vector.load %arg3[%c0_48, %c0_49] : memref<16x32xbf16, #tpu.memory_space<vmem>>, vector<16x32xbf16>
      %cst_50 = arith.constant dense<0.000000e+00> : vector<16x32xf32>
      %65 = tpu.matmul %63, %64, %cst_50 {dimension_numbers = #tpu.dot_dimension_numbers<[1], [0], [0], [1], [0, 0, 1, 1], [], []>} : vector<16x16xbf16>, vector<16x32xbf16>, vector<16x32xf32> -> vector<16x32xf32>
      %66 = arith.truncf %65 : vector<16x32xf32> to vector<16x32xbf16>
      %c3_51 = arith.constant 3 : index
      %c0_52 = arith.constant 0 : index
      %c0_53 = arith.constant 0 : index
      %67 = vector.load %arg4[%c3_51, %c0_52, %c0_53] : memref<4x32x128xbf16, #tpu.memory_space<vmem>>, vector<1x32x128xbf16>
      %68 = vector.shape_cast %67 : vector<1x32x128xbf16> to vector<32x128xbf16>
      %cst_54 = arith.constant dense<0.000000e+00> : vector<16x128xf32>
      %69 = tpu.matmul %66, %68, %cst_54 {dimension_numbers = #tpu.dot_dimension_numbers<[1], [0], [0], [1], [0, 0, 1, 1], [], []>} : vector<16x32xbf16>, vector<32x128xbf16>, vector<16x128xf32> -> vector<16x128xf32>
      %c3_55 = arith.constant 3 : index
      %c0_56 = arith.constant 0 : index
      %c0_57 = arith.constant 0 : index
      %70 = vector.load %arg5[%c3_55, %c0_56, %c0_57] : memref<4x1x128xf32, #tpu.memory_space<vmem>>, vector<1x1x128xf32>
      %71 = vector.shape_cast %70 : vector<1x1x128xf32> to vector<1x128xf32>
      %72 = vector.broadcast %71 : vector<1x128xf32> to vector<16x128xf32>
      %73 = arith.addf %69, %72 : vector<16x128xf32>
      %74 = math.tanh %73 : vector<16x128xf32>
      %75 = arith.truncf %74 : vector<16x128xf32> to vector<16x128xbf16>
      %c0_58 = arith.constant 0 : index
      %c3_59 = arith.constant 3 : index
      %76 = arith.index_cast %1 : i32 to index
      %c0_60 = arith.constant 0 : index
      %77 = vector.load %arg11[%c0_58, %c3_59, %76, %c0_60] : memref<2x4x16x128xbf16, #tpu.memory_space<vmem>>, vector<1x1x16x128xbf16>
      %78 = vector.shape_cast %77 : vector<1x1x16x128xbf16> to vector<16x128xbf16>
      %79 = vector.shape_cast %75 : vector<16x128xbf16> to vector<1x1x16x128xbf16>
      tpu.vector_store %arg11[%c0_58, %c3_59, %76, %c0_60], %79 {strides = array<i32>} : memref<2x4x16x128xbf16, #tpu.memory_space<vmem>>, vector<1x1x16x128xbf16>,
    } else {
    }
    %c1_i32 = arith.constant 1 : i32
    %5 = arith.cmpi eq, %arg0, %c1_i32 : i32
    %6 = arith.extui %5 : i1 to i32
    %c0_i32_1 = arith.constant 0 : i32
    %7 = arith.cmpi ne, %6, %c0_i32_1 : i32
    scf.if %7 {
      %c0 = arith.constant 0 : index
      %c0_2 = arith.constant 0 : index
      %c0_3 = arith.constant 0 : index
      %8 = vector.load %arg2[%c0, %c0_2, %c0_3] : memref<4x16x16xbf16, #tpu.memory_space<vmem>>, vector<1x16x16xbf16>
      %9 = vector.shape_cast %8 : vector<1x16x16xbf16> to vector<16x16xbf16>
      %c0_4 = arith.constant 0 : index
      %c0_5 = arith.constant 0 : index
      %c0_6 = arith.constant 0 : index
      %c0_7 = arith.constant 0 : index
      %10 = vector.load %arg11[%c0_4, %c0_5, %c0_6, %c0_7] : memref<2x4x16x128xbf16, #tpu.memory_space<vmem>>, vector<1x1x16x128xbf16>
      %11 = vector.shape_cast %10 : vector<1x1x16x128xbf16> to vector<16x128xbf16>
      %cst = arith.constant dense<0.000000e+00> : vector<16x128xf32>
      %12 = tpu.matmul %9, %11, %cst {dimension_numbers = #tpu.dot_dimension_numbers<[1], [0], [0], [1], [0, 0, 1, 1], [], []>} : vector<16x16xbf16>, vector<16x128xbf16>, vector<16x128xf32> -> vector<16x128xf32>
      %13 = arith.truncf %12 : vector<16x128xf32> to vector<16x128xbf16>
      %c0_8 = arith.constant 0 : index
      %c0_9 = arith.constant 0 : index
      %c0_10 = arith.constant 0 : index
      %14 = vector.load %arg6[%c0_8, %c0_9, %c0_10] : memref<4x128x128xbf16, #tpu.memory_space<vmem>>, vector<1x128x128xbf16>
      %15 = vector.shape_cast %14 : vector<1x128x128xbf16> to vector<128x128xbf16>
      %cst_11 = arith.constant dense<0.000000e+00> : vector<16x128xf32>
      %16 = tpu.matmul %13, %15, %cst_11 {dimension_numbers = #tpu.dot_dimension_numbers<[1], [0], [0], [1], [0, 0, 1, 1], [], []>} : vector<16x128xbf16>, vector<128x128xbf16>, vector<16x128xf32> -> vector<16x128xf32>
      %c0_12 = arith.constant 0 : index
      %c0_13 = arith.constant 0 : index
      %c0_14 = arith.constant 0 : index
      %17 = vector.load %arg7[%c0_12, %c0_13, %c0_14] : memref<4x1x128xf32, #tpu.memory_space<vmem>>, vector<1x1x128xf32>
      %18 = vector.shape_cast %17 : vector<1x1x128xf32> to vector<1x128xf32>
      %19 = vector.broadcast %18 : vector<1x128xf32> to vector<16x128xf32>
      %20 = arith.addf %16, %19 : vector<16x128xf32>
      %21 = math.tanh %20 : vector<16x128xf32>
      %22 = arith.truncf %21 : vector<16x128xf32> to vector<16x128xbf16>
      %c1 = arith.constant 1 : index
      %c0_15 = arith.constant 0 : index
      %23 = arith.index_cast %1 : i32 to index
      %c0_16 = arith.constant 0 : index
      %24 = vector.load %arg11[%c1, %c0_15, %23, %c0_16] : memref<2x4x16x128xbf16, #tpu.memory_space<vmem>>, vector<1x1x16x128xbf16>
      %25 = vector.shape_cast %24 : vector<1x1x16x128xbf16> to vector<16x128xbf16>
      %26 = vector.shape_cast %22 : vector<16x128xbf16> to vector<1x1x16x128xbf16>
      tpu.vector_store %arg11[%c1, %c0_15, %23, %c0_16], %26 {strides = array<i32>} : memref<2x4x16x128xbf16, #tpu.memory_space<vmem>>, vector<1x1x16x128xbf16>,
      %c1_17 = arith.constant 1 : index
      %c0_18 = arith.constant 0 : index
      %c0_19 = arith.constant 0 : index
      %27 = vector.load %arg2[%c1_17, %c0_18, %c0_19] : memref<4x16x16xbf16, #tpu.memory_space<vmem>>, vector<1x16x16xbf16>
      %28 = vector.shape_cast %27 : vector<1x16x16xbf16> to vector<16x16xbf16>
      %c0_20 = arith.constant 0 : index
      %c1_21 = arith.constant 1 : index
      %c0_22 = arith.constant 0 : index
      %c0_23 = arith.constant 0 : index
      %29 = vector.load %arg11[%c0_20, %c1_21, %c0_22, %c0_23] : memref<2x4x16x128xbf16, #tpu.memory_space<vmem>>, vector<1x1x16x128xbf16>
      %30 = vector.shape_cast %29 : vector<1x1x16x128xbf16> to vector<16x128xbf16>
      %cst_24 = arith.constant dense<0.000000e+00> : vector<16x128xf32>
      %31 = tpu.matmul %28, %30, %cst_24 {dimension_numbers = #tpu.dot_dimension_numbers<[1], [0], [0], [1], [0, 0, 1, 1], [], []>} : vector<16x16xbf16>, vector<16x128xbf16>, vector<16x128xf32> -> vector<16x128xf32>
      %32 = arith.truncf %31 : vector<16x128xf32> to vector<16x128xbf16>
      %c1_25 = arith.constant 1 : index
      %c0_26 = arith.constant 0 : index
      %c0_27 = arith.constant 0 : index
      %33 = vector.load %arg6[%c1_25, %c0_26, %c0_27] : memref<4x128x128xbf16, #tpu.memory_space<vmem>>, vector<1x128x128xbf16>
      %34 = vector.shape_cast %33 : vector<1x128x128xbf16> to vector<128x128xbf16>
      %cst_28 = arith.constant dense<0.000000e+00> : vector<16x128xf32>
      %35 = tpu.matmul %32, %34, %cst_28 {dimension_numbers = #tpu.dot_dimension_numbers<[1], [0], [0], [1], [0, 0, 1, 1], [], []>} : vector<16x128xbf16>, vector<128x128xbf16>, vector<16x128xf32> -> vector<16x128xf32>
      %c1_29 = arith.constant 1 : index
      %c0_30 = arith.constant 0 : index
      %c0_31 = arith.constant 0 : index
      %36 = vector.load %arg7[%c1_29, %c0_30, %c0_31] : memref<4x1x128xf32, #tpu.memory_space<vmem>>, vector<1x1x128xf32>
      %37 = vector.shape_cast %36 : vector<1x1x128xf32> to vector<1x128xf32>
      %38 = vector.broadcast %37 : vector<1x128xf32> to vector<16x128xf32>
      %39 = arith.addf %35, %38 : vector<16x128xf32>
      %40 = math.tanh %39 : vector<16x128xf32>
      %41 = arith.truncf %40 : vector<16x128xf32> to vector<16x128xbf16>
      %c1_32 = arith.constant 1 : index
      %c1_33 = arith.constant 1 : index
      %42 = arith.index_cast %1 : i32 to index
      %c0_34 = arith.constant 0 : index
      %43 = vector.load %arg11[%c1_32, %c1_33, %42, %c0_34] : memref<2x4x16x128xbf16, #tpu.memory_space<vmem>>, vector<1x1x16x128xbf16>
      %44 = vector.shape_cast %43 : vector<1x1x16x128xbf16> to vector<16x128xbf16>
      %45 = vector.shape_cast %41 : vector<16x128xbf16> to vector<1x1x16x128xbf16>
      tpu.vector_store %arg11[%c1_32, %c1_33, %42, %c0_34], %45 {strides = array<i32>} : memref<2x4x16x128xbf16, #tpu.memory_space<vmem>>, vector<1x1x16x128xbf16>,
      %c2 = arith.constant 2 : index
      %c0_35 = arith.constant 0 : index
      %c0_36 = arith.constant 0 : index
      %46 = vector.load %arg2[%c2, %c0_35, %c0_36] : memref<4x16x16xbf16, #tpu.memory_space<vmem>>, vector<1x16x16xbf16>
      %47 = vector.shape_cast %46 : vector<1x16x16xbf16> to vector<16x16xbf16>
      %c0_37 = arith.constant 0 : index
      %c2_38 = arith.constant 2 : index
      %c0_39 = arith.constant 0 : index
      %c0_40 = arith.constant 0 : index
      %48 = vector.load %arg11[%c0_37, %c2_38, %c0_39, %c0_40] : memref<2x4x16x128xbf16, #tpu.memory_space<vmem>>, vector<1x1x16x128xbf16>
      %49 = vector.shape_cast %48 : vector<1x1x16x128xbf16> to vector<16x128xbf16>
      %cst_41 = arith.constant dense<0.000000e+00> : vector<16x128xf32>
      %50 = tpu.matmul %47, %49, %cst_41 {dimension_numbers = #tpu.dot_dimension_numbers<[1], [0], [0], [1], [0, 0, 1, 1], [], []>} : vector<16x16xbf16>, vector<16x128xbf16>, vector<16x128xf32> -> vector<16x128xf32>
      %51 = arith.truncf %50 : vector<16x128xf32> to vector<16x128xbf16>
      %c2_42 = arith.constant 2 : index
      %c0_43 = arith.constant 0 : index
      %c0_44 = arith.constant 0 : index
      %52 = vector.load %arg6[%c2_42, %c0_43, %c0_44] : memref<4x128x128xbf16, #tpu.memory_space<vmem>>, vector<1x128x128xbf16>
      %53 = vector.shape_cast %52 : vector<1x128x128xbf16> to vector<128x128xbf16>
      %cst_45 = arith.constant dense<0.000000e+00> : vector<16x128xf32>
      %54 = tpu.matmul %51, %53, %cst_45 {dimension_numbers = #tpu.dot_dimension_numbers<[1], [0], [0], [1], [0, 0, 1, 1], [], []>} : vector<16x128xbf16>, vector<128x128xbf16>, vector<16x128xf32> -> vector<16x128xf32>
      %c2_46 = arith.constant 2 : index
      %c0_47 = arith.constant 0 : index
      %c0_48 = arith.constant 0 : index
      %55 = vector.load %arg7[%c2_46, %c0_47, %c0_48] : memref<4x1x128xf32, #tpu.memory_space<vmem>>, vector<1x1x128xf32>
      %56 = vector.shape_cast %55 : vector<1x1x128xf32> to vector<1x128xf32>
      %57 = vector.broadcast %56 : vector<1x128xf32> to vector<16x128xf32>
      %58 = arith.addf %54, %57 : vector<16x128xf32>
      %59 = math.tanh %58 : vector<16x128xf32>
      %60 = arith.truncf %59 : vector<16x128xf32> to vector<16x128xbf16>
      %c1_49 = arith.constant 1 : index
      %c2_50 = arith.constant 2 : index
      %61 = arith.index_cast %1 : i32 to index
      %c0_51 = arith.constant 0 : index
      %62 = vector.load %arg11[%c1_49, %c2_50, %61, %c0_51] : memref<2x4x16x128xbf16, #tpu.memory_space<vmem>>, vector<1x1x16x128xbf16>
      %63 = vector.shape_cast %62 : vector<1x1x16x128xbf16> to vector<16x128xbf16>
      %64 = vector.shape_cast %60 : vector<16x128xbf16> to vector<1x1x16x128xbf16>
      tpu.vector_store %arg11[%c1_49, %c2_50, %61, %c0_51], %64 {strides = array<i32>} : memref<2x4x16x128xbf16, #tpu.memory_space<vmem>>, vector<1x1x16x128xbf16>,
      %c3 = arith.constant 3 : index
      %c0_52 = arith.constant 0 : index
      %c0_53 = arith.constant 0 : index
      %65 = vector.load %arg2[%c3, %c0_52, %c0_53] : memref<4x16x16xbf16, #tpu.memory_space<vmem>>, vector<1x16x16xbf16>
      %66 = vector.shape_cast %65 : vector<1x16x16xbf16> to vector<16x16xbf16>
      %c0_54 = arith.constant 0 : index
      %c3_55 = arith.constant 3 : index
      %c0_56 = arith.constant 0 : index
      %c0_57 = arith.constant 0 : index
      %67 = vector.load %arg11[%c0_54, %c3_55, %c0_56, %c0_57] : memref<2x4x16x128xbf16, #tpu.memory_space<vmem>>, vector<1x1x16x128xbf16>
      %68 = vector.shape_cast %67 : vector<1x1x16x128xbf16> to vector<16x128xbf16>
      %cst_58 = arith.constant dense<0.000000e+00> : vector<16x128xf32>
      %69 = tpu.matmul %66, %68, %cst_58 {dimension_numbers = #tpu.dot_dimension_numbers<[1], [0], [0], [1], [0, 0, 1, 1], [], []>} : vector<16x16xbf16>, vector<16x128xbf16>, vector<16x128xf32> -> vector<16x128xf32>
      %70 = arith.truncf %69 : vector<16x128xf32> to vector<16x128xbf16>
      %c3_59 = arith.constant 3 : index
      %c0_60 = arith.constant 0 : index
      %c0_61 = arith.constant 0 : index
      %71 = vector.load %arg6[%c3_59, %c0_60, %c0_61] : memref<4x128x128xbf16, #tpu.memory_space<vmem>>, vector<1x128x128xbf16>
      %72 = vector.shape_cast %71 : vector<1x128x128xbf16> to vector<128x128xbf16>
      %cst_62 = arith.constant dense<0.000000e+00> : vector<16x128xf32>
      %73 = tpu.matmul %70, %72, %cst_62 {dimension_numbers = #tpu.dot_dimension_numbers<[1], [0], [0], [1], [0, 0, 1, 1], [], []>} : vector<16x128xbf16>, vector<128x128xbf16>, vector<16x128xf32> -> vector<16x128xf32>
      %c3_63 = arith.constant 3 : index
      %c0_64 = arith.constant 0 : index
      %c0_65 = arith.constant 0 : index
      %74 = vector.load %arg7[%c3_63, %c0_64, %c0_65] : memref<4x1x128xf32, #tpu.memory_space<vmem>>, vector<1x1x128xf32>
      %75 = vector.shape_cast %74 : vector<1x1x128xf32> to vector<1x128xf32>
      %76 = vector.broadcast %75 : vector<1x128xf32> to vector<16x128xf32>
      %77 = arith.addf %73, %76 : vector<16x128xf32>
      %78 = math.tanh %77 : vector<16x128xf32>
      %79 = arith.truncf %78 : vector<16x128xf32> to vector<16x128xbf16>
      %c1_66 = arith.constant 1 : index
      %c3_67 = arith.constant 3 : index
      %80 = arith.index_cast %1 : i32 to index
      %c0_68 = arith.constant 0 : index
      %81 = vector.load %arg11[%c1_66, %c3_67, %80, %c0_68] : memref<2x4x16x128xbf16, #tpu.memory_space<vmem>>, vector<1x1x16x128xbf16>
      %82 = vector.shape_cast %81 : vector<1x1x16x128xbf16> to vector<16x128xbf16>
      %83 = vector.shape_cast %79 : vector<16x128xbf16> to vector<1x1x16x128xbf16>
      tpu.vector_store %arg11[%c1_66, %c3_67, %80, %c0_68], %83 {strides = array<i32>} : memref<2x4x16x128xbf16, #tpu.memory_space<vmem>>, vector<1x1x16x128xbf16>,
      %c0_69 = arith.constant 0 : index
      %c0_70 = arith.constant 0 : index
      %84 = vector.load %arg9[%c0_69, %c0_70] : memref<1x128xf32, #tpu.memory_space<vmem>>, vector<1x128xf32>
      %c0_71 = arith.constant 0 : index
      %c0_72 = arith.constant 0 : index
      %c0_73 = arith.constant 0 : index
      %85 = vector.load %arg8[%c0_71, %c0_72, %c0_73] : memref<4x128x128xbf16, #tpu.memory_space<vmem>>, vector<1x128x128xbf16>
      %86 = vector.shape_cast %85 : vector<1x128x128xbf16> to vector<128x128xbf16>
      %cst_74 = arith.constant dense<0.000000e+00> : vector<16x128xf32>
      %87 = tpu.matmul %22, %86, %cst_74 {dimension_numbers = #tpu.dot_dimension_numbers<[1], [0], [0], [1], [0, 0, 1, 1], [], []>} : vector<16x128xbf16>, vector<128x128xbf16>, vector<16x128xf32> -> vector<16x128xf32>
      %88 = vector.broadcast %84 : vector<1x128xf32> to vector<16x128xf32>
      %89 = arith.addf %88, %87 : vector<16x128xf32>
      %c1_75 = arith.constant 1 : index
      %c0_76 = arith.constant 0 : index
      %c0_77 = arith.constant 0 : index
      %90 = vector.load %arg8[%c1_75, %c0_76, %c0_77] : memref<4x128x128xbf16, #tpu.memory_space<vmem>>, vector<1x128x128xbf16>
      %91 = vector.shape_cast %90 : vector<1x128x128xbf16> to vector<128x128xbf16>
      %cst_78 = arith.constant dense<0.000000e+00> : vector<16x128xf32>
      %92 = tpu.matmul %41, %91, %cst_78 {dimension_numbers = #tpu.dot_dimension_numbers<[1], [0], [0], [1], [0, 0, 1, 1], [], []>} : vector<16x128xbf16>, vector<128x128xbf16>, vector<16x128xf32> -> vector<16x128xf32>
      %93 = arith.addf %89, %92 : vector<16x128xf32>
      %c2_79 = arith.constant 2 : index
      %c0_80 = arith.constant 0 : index
      %c0_81 = arith.constant 0 : index
      %94 = vector.load %arg8[%c2_79, %c0_80, %c0_81] : memref<4x128x128xbf16, #tpu.memory_space<vmem>>, vector<1x128x128xbf16>
      %95 = vector.shape_cast %94 : vector<1x128x128xbf16> to vector<128x128xbf16>
      %cst_82 = arith.constant dense<0.000000e+00> : vector<16x128xf32>
      %96 = tpu.matmul %60, %95, %cst_82 {dimension_numbers = #tpu.dot_dimension_numbers<[1], [0], [0], [1], [0, 0, 1, 1], [], []>} : vector<16x128xbf16>, vector<128x128xbf16>, vector<16x128xf32> -> vector<16x128xf32>
      %97 = arith.addf %93, %96 : vector<16x128xf32>
      %c3_83 = arith.constant 3 : index
      %c0_84 = arith.constant 0 : index
      %c0_85 = arith.constant 0 : index
      %98 = vector.load %arg8[%c3_83, %c0_84, %c0_85] : memref<4x128x128xbf16, #tpu.memory_space<vmem>>, vector<1x128x128xbf16>
      %99 = vector.shape_cast %98 : vector<1x128x128xbf16> to vector<128x128xbf16>
      %cst_86 = arith.constant dense<0.000000e+00> : vector<16x128xf32>
      %100 = tpu.matmul %79, %99, %cst_86 {dimension_numbers = #tpu.dot_dimension_numbers<[1], [0], [0], [1], [0, 0, 1, 1], [], []>} : vector<16x128xbf16>, vector<128x128xbf16>, vector<16x128xf32> -> vector<16x128xf32>
      %101 = arith.addf %97, %100 : vector<16x128xf32>
      %102 = vector.extract_strided_slice %101 {offsets = [0, 32], sizes = [16, 8], strides = [1, 1]} : vector<16x128xf32> to vector<16x8xf32>
      %cst_87 = arith.constant dense<0xFF800000> : vector<16xf32>
      %103 = vector.multi_reduction <maximumf>, %102, %cst_87 [1] : vector<16x8xf32> to vector<16xf32>
      %104 = vector.shape_cast %103 : vector<16xf32> to vector<16x1xf32>
      %105 = vector.broadcast %104 : vector<16x1xf32> to vector<16x8xf32>
      %106 = arith.subf %102, %105 : vector<16x8xf32>
      %107 = math.exp %106 : vector<16x8xf32>
      %cst_88 = arith.constant dense<0.000000e+00> : vector<16xf32>
      %108 = vector.multi_reduction <add>, %107, %cst_88 [1] : vector<16x8xf32> to vector<16xf32>
      %109 = vector.shape_cast %108 : vector<16xf32> to vector<16x1xf32>
      %110 = math.log %109 : vector<16x1xf32>
      %111 = vector.broadcast %110 : vector<16x1xf32> to vector<16x8xf32>
      %112 = arith.subf %106, %111 : vector<16x8xf32>
      %113 = arith.index_cast %1 : i32 to index
      %c0_89 = arith.constant 0 : index
      %114 = vector.load %arg10[%113, %c0_89] : memref<16x128xf32, #tpu.memory_space<vmem>>, vector<16x8xf32>
      tpu.vector_store %arg10[%113, %c0_89], %112 {strides = array<i32>} : memref<16x128xf32, #tpu.memory_space<vmem>>, vector<16x8xf32>,
      %115 = vector.extract_strided_slice %101 {offsets = [0, 16], sizes = [16, 8], strides = [1, 1]} : vector<16x128xf32> to vector<16x8xf32>
      %cst_90 = arith.constant dense<0xFF800000> : vector<16xf32>
      %116 = vector.multi_reduction <maximumf>, %115, %cst_90 [1] : vector<16x8xf32> to vector<16xf32>
      %117 = vector.shape_cast %116 : vector<16xf32> to vector<16x1xf32>
      %118 = vector.broadcast %117 : vector<16x1xf32> to vector<16x8xf32>
      %119 = arith.subf %115, %118 : vector<16x8xf32>
      %120 = math.exp %119 : vector<16x8xf32>
      %cst_91 = arith.constant dense<0.000000e+00> : vector<16xf32>
      %121 = vector.multi_reduction <add>, %120, %cst_91 [1] : vector<16x8xf32> to vector<16xf32>
      %122 = vector.shape_cast %121 : vector<16xf32> to vector<16x1xf32>
      %123 = math.log %122 : vector<16x1xf32>
      %124 = vector.broadcast %123 : vector<16x1xf32> to vector<16x8xf32>
      %125 = arith.subf %119, %124 : vector<16x8xf32>
      %126 = arith.index_cast %1 : i32 to index
      %c8 = arith.constant 8 : index
      %127 = vector.load %arg10[%126, %c8] : memref<16x128xf32, #tpu.memory_space<vmem>>, vector<16x8xf32>
      tpu.vector_store %arg10[%126, %c8], %125 {strides = array<i32>} : memref<16x128xf32, #tpu.memory_space<vmem>>, vector<16x8xf32>,
      %128 = vector.extract_strided_slice %101 {offsets = [0, 24], sizes = [16, 8], strides = [1, 1]} : vector<16x128xf32> to vector<16x8xf32>
      %cst_92 = arith.constant dense<0xFF800000> : vector<16xf32>
      %129 = vector.multi_reduction <maximumf>, %128, %cst_92 [1] : vector<16x8xf32> to vector<16xf32>
      %130 = vector.shape_cast %129 : vector<16xf32> to vector<16x1xf32>
      %131 = vector.broadcast %130 : vector<16x1xf32> to vector<16x8xf32>
      %132 = arith.subf %128, %131 : vector<16x8xf32>
      %133 = math.exp %132 : vector<16x8xf32>
      %cst_93 = arith.constant dense<0.000000e+00> : vector<16xf32>
      %134 = vector.multi_reduction <add>, %133, %cst_93 [1] : vector<16x8xf32> to vector<16xf32>
      %135 = vector.shape_cast %134 : vector<16xf32> to vector<16x1xf32>
      %136 = math.log %135 : vector<16x1xf32>
      %137 = vector.broadcast %136 : vector<16x1xf32> to vector<16x8xf32>
      %138 = arith.subf %132, %137 : vector<16x8xf32>
      %139 = arith.index_cast %1 : i32 to index
      %c16 = arith.constant 16 : index
      %140 = vector.load %arg10[%139, %c16] : memref<16x128xf32, #tpu.memory_space<vmem>>, vector<16x8xf32>
      tpu.vector_store %arg10[%139, %c16], %138 {strides = array<i32>} : memref<16x128xf32, #tpu.memory_space<vmem>>, vector<16x8xf32>,
      %141 = vector.extract_strided_slice %101 {offsets = [0, 0], sizes = [16, 8], strides = [1, 1]} : vector<16x128xf32> to vector<16x8xf32>
      %142 = arith.index_cast %1 : i32 to index
      %c24 = arith.constant 24 : index
      %143 = vector.load %arg10[%142, %c24] : memref<16x128xf32, #tpu.memory_space<vmem>>, vector<16x8xf32>
      tpu.vector_store %arg10[%142, %c24], %141 {strides = array<i32>} : memref<16x128xf32, #tpu.memory_space<vmem>>, vector<16x8xf32>,
      %cst_94 = arith.constant 0.000000e+00 : f32
      %144 = vector.broadcast %cst_94 : f32 to vector<16x96xf32>
      %145 = arith.index_cast %1 : i32 to index
      %c32 = arith.constant 32 : index
      %146 = vector.load %arg10[%145, %c32] : memref<16x128xf32, #tpu.memory_space<vmem>>, vector<16x96xf32>
      tpu.vector_store %arg10[%145, %c32], %144 {strides = array<i32>} : memref<16x128xf32, #tpu.memory_space<vmem>>, vector<16x96xf32>,
    } else {
    }
    return
  }
  func.func @transform_0(%arg0: i32, %arg1: i32) -> (i32, i32, i32) {
    %c0_i32 = arith.constant 0 : i32
    %c0_i32_0 = arith.constant 0 : i32
    %c0_i32_1 = arith.constant 0 : i32
    return %c0_i32, %arg1, %c0_i32_0 : i32, i32, i32
  }
  func.func @transform_1(%arg0: i32, %arg1: i32) -> (i32, i32) {
    %c0_i32 = arith.constant 0 : i32
    %c0_i32_0 = arith.constant 0 : i32
    %c0_i32_1 = arith.constant 0 : i32
    return %c0_i32, %c0_i32_0 : i32, i32
  }
  func.func @transform_2(%arg0: i32, %arg1: i32) -> (i32, i32, i32) {
    %c0_i32 = arith.constant 0 : i32
    %c0_i32_0 = arith.constant 0 : i32
    %c0_i32_1 = arith.constant 0 : i32
    %c0_i32_2 = arith.constant 0 : i32
    return %c0_i32, %c0_i32_0, %c0_i32_1 : i32, i32, i32
  }
  func.func @transform_3(%arg0: i32, %arg1: i32) -> (i32, i32, i32) {
    %c0_i32 = arith.constant 0 : i32
    %c0_i32_0 = arith.constant 0 : i32
    %c0_i32_1 = arith.constant 0 : i32
    %c0_i32_2 = arith.constant 0 : i32
    return %c0_i32, %c0_i32_0, %c0_i32_1 : i32, i32, i32
  }
  func.func @transform_4(%arg0: i32, %arg1: i32) -> (i32, i32, i32) {
    %c0_i32 = arith.constant 0 : i32
    %c0_i32_0 = arith.constant 0 : i32
    %c0_i32_1 = arith.constant 0 : i32
    %c0_i32_2 = arith.constant 0 : i32
    return %c0_i32, %c0_i32_0, %c0_i32_1 : i32, i32, i32
  }
  func.func @transform_5(%arg0: i32, %arg1: i32) -> (i32, i32, i32) {
    %c0_i32 = arith.constant 0 : i32
    %c0_i32_0 = arith.constant 0 : i32
    %c0_i32_1 = arith.constant 0 : i32
    %c0_i32_2 = arith.constant 0 : i32
    return %c0_i32, %c0_i32_0, %c0_i32_1 : i32, i32, i32
  }
  func.func @transform_6(%arg0: i32, %arg1: i32) -> (i32, i32, i32) {
    %c0_i32 = arith.constant 0 : i32
    %c0_i32_0 = arith.constant 0 : i32
    %c0_i32_1 = arith.constant 0 : i32
    %c0_i32_2 = arith.constant 0 : i32
    return %c0_i32, %c0_i32_0, %c0_i32_1 : i32, i32, i32
  }
  func.func @transform_7(%arg0: i32, %arg1: i32) -> (i32, i32) {
    %c0_i32 = arith.constant 0 : i32
    %c0_i32_0 = arith.constant 0 : i32
    %c0_i32_1 = arith.constant 0 : i32
    return %c0_i32, %c0_i32_0 : i32, i32
  }
  func.func @transform_8(%arg0: i32, %arg1: i32) -> (i32, i32) {
    %c0_i32 = arith.constant 0 : i32
    %c0_i32_0 = arith.constant 0 : i32
    %c0_i32_1 = arith.constant 0 : i32
    return %c0_i32, %c0_i32_0 : i32, i32
  }
}

</mosaic_0001>

<bundles_post_ra>
// kernel: _lambda_.1
= control target key start
LH: loop header
LB: loop body
LE: loop exit
PB: predicated region body
PF: predicated region fallthrough
CT: control target
= control target key end

     0   :  { %13 = vsyncpa [#allocation4], 0  ;;  %s3676_s0 = inlined_call_operand.vmem [shape: bf16[4,16,16], index: 0, kind: input, shape index: {}]   ;;  %s3677_s1 = inlined_call_operand.vmem [shape: bf16[16,32], index: 1, kind: input, shape index: {}]   ;;  %s3678_s2 = inlined_call_operand.vmem [shape: bf16[4,32,128], index: 2, kind: input, shape index: {}]   ;;  %s3679_s3 = inlined_call_operand.vmem [shape: f32[4,1,128], index: 3, kind: input, shape index: {}]   ;;  %s3680_s4 = inlined_call_operand.hbm [shape: bf16[4,128,128], index: 4, kind: input, shape index: {}]   ;;  %s3681_s5 = inlined_call_operand.vmem [shape: f32[4,1,128], index: 5, kind: input, shape index: {}]   ;;  %s3682_s6 = inlined_call_operand.hbm [shape: bf16[4,128,128], index: 6, kind: input, shape index: {}]   ;;  %s3683_s7 = inlined_call_operand.vmem [shape: f32[1,128], index: 7, kind: input, shape index: {}]   ;;  %s3684_s8 = inlined_call_operand.vmem [shape: f32[16,128], index: 8, kind: output, shape index: {}]  }
   0x1   :  { %14 = vsyncpa [#allocation6], 0  ;;  %s3287_s27 = smov 0   ;;  %s3289_s28 = smov 0  }
   0x2   :  { %s3291_s29 = smov 0  }
   0x3 LB: > { %s2361_s30 = sadd.s32 4294967295, %s3227_s29   ;;  %s32_s9 = sadd.s32 1, %s3223_s28  ;;  %s3227_s29 = sphi %s3291_s29, %s20_s29   ;;  %s3223_s28 = sphi %s3289_s28, %s3689_s28   ;;  %s3219_s27 = sphi %s3287_s27, %s3688_s27  }
   0x4   : > { %p34_p0 = scmp.ge.s32.totalorder %s32_s9, 2  ;;  %p2362_p1 = scmp.ge.s32.totalorder %s3227_s29, 1 }
   0x5   : > { %p231_p2 = scmp.lt.s32.totalorder %s3227_s29, 3  ;;  %p3312_p4 = scmp.eq.s32.totalorder %s2361_s30, 0 }
   0x6   : > { %s3691_s9 = smov (%p34_p0, %s32_s9), 0  ;;  %s3229_s12 = smov [#allocation3]  }
   0x7   : > { %p3308_p3 = pnand %p2362_p1, %p231_p2  ;;  %s261_s13 = sshll.u32 %s3229_s12, 4  ;;  %s262_s13 = int_to_ptr.vmem [resolvable:$true] %s261_s13 }
   0x8   : > { %s3230_s15 = smov [#allocation5]   ;;  %s3156_s17 = scalar_lea.vmem %s262_s13, 4096 }
   0x9   : > { %p2953_p5 = pneg %p3308_p3  ;;  %s277_s16 = sshll.u32 %s3230_s15, 4  ;;  %s278_s16 = int_to_ptr.vmem [resolvable:$true] %s277_s16 }
   0xa   : > { %p3157_p8 = scmp.ne.s32.totalorder %s262_s13, %s3156_s17  ;;  %p3164_p11 = scmp.lt.s32.totalorder %s262_s13, %s262_s13 }
   0xb   : > { %p3320_p6 = pnand %p3312_p4, %p2953_p5  ;;  %p3165_p12 = scmp.lt.s32.totalorder %s3156_s17, %s3156_s17 }
   0xd   : > { %p3147_p7 = pneg %p3320_p6  ;;  %p3166_p13 = por %p3165_p12, %p3164_p11 }
   0xf   : > { %p3159_p9 = pnand %p3157_p8, %p3147_p7 }
  0x11   : > { %p3160_p10 = pneg %p3159_p9 }
  0x13   : > { %p3167_p0 = pnand %p3166_p13, %p3160_p10 }
  0x15   : > { %3170 = shalt.err (!%p3167_p0)
}
  0x16   : > { %s3231_s18 = smov 64   ;;  %s3232_s19 = smov 4  }
  0x17   : > { %2956 = dma.hbm_to_vmem [thread:$0]  (!%p3320_p6), %s3680_s4, 4096, %s262_s13, [#allocation4], %s3231_s18, %s3231_s18, %s3232_s19  }
  0x18   : > { %s3182_s22 = scalar_lea.vmem %s278_s16, 4096  ;;  %p3190_p8 = scmp.lt.s32.totalorder %s278_s16, %s278_s16 }
  0x19   : > { %p3183_p1 = scmp.ne.s32.totalorder %s278_s16, %s3182_s22  ;;  %p3191_p9 = scmp.lt.s32.totalorder %s3182_s22, %s3182_s22 }
  0x1b   : > { %p3185_p2 = pnand %p3183_p1, %p3147_p7  ;;  %p3192_p11 = por %p3191_p9, %p3190_p8 }
  0x1d   : > { %p3186_p5 = pneg %p3185_p2 }
  0x1f   : > { %p3193_p10 = pnand %p3192_p11, %p3186_p5 }
  0x21   : > { %3196 = shalt.err (!%p3193_p10)
}
  0x22   : > { %2959 = dma.hbm_to_vmem [thread:$0]  (!%p3320_p6), %s3682_s6, 4096, %s278_s16, [#allocation6], %s3231_s18, %s3231_s18, %s3232_s19  }
  0x23   : > { %296 = sbr.rel (%p3308_p3) target bundleno = 1891 (0x763), region = 52 }
  0x28   : > { %3210 = dma.done.wait (%p3312_p4), [#allocation4], 4096  }
  0x29   : > { %3212 = vsyncadd (%p3312_p4), [#allocation4], 4294963200 }
  0x2a   : > { %3214 = dma.done.wait (%p3312_p4), [#allocation6], 4096  }
  0x2b   : > { %3216 = vsyncadd (%p3312_p4), [#allocation6], 4294963200  ;;  %p2369_p7 = scmp.ne.s32.totalorder %s3219_s27, 0 }
  0x2d   : > { %340 = sbr.rel (%p2369_p7) target bundleno = 494 (0x1ee), region = 64 }
  0x32   : > { %v3001_v0 = vld [vmem:[%s3677_s1] sm:$0xff]   ;;  %v3233_v1 = vmov 0.0   ;;  %vm3234_vm0 = vmmov 0   ;;  %vm356_vm1 = vcmask 130048   ;;  %v3004_v4 = vld [vmem:[%s3676_s0 + $0x8] sm:$0xff]   ;;  %v3006_v6 = vld [vmem:[%s3676_s0 + $0x10] sm:$0xff]  }
  0x33   : > { %2705 = vmatprep.subr.bf16.mxu0 %v3233_v1  ;;  %v3002_v2 = vld [vmem:[%s3676_s0] sm:$0xff]   ;;  %2711 = vmatprep.subr.bf16.mxu1 %v3233_v1  ;;  %v3008_v8 = vld [vmem:[%s3676_s0 + $0x18] sm:$0xff]   ;;  %v3009_v9 = vld [vmem:[%s3678_s2 + $0x8] sm:$0xff]   ;;  %vm425_vm2 = vcmask 261120  }
  0x34   : > { %2706 = vmatpush3.bf16.msra.mxu0 %v3001_v0  ;;  %2707 = vmatprep.mubr.msk.bf16.mxu0 %vm3234_vm0, %v3233_v1  ;;  %v3003_v3 = vld [vmem:[%s3677_s1] sm:$0xff]   ;;  %v3011_v14 = vld [vmem:[%s3678_s2 + $0x18] sm:$0xff]   ;;  %v3012_v18 = vld [vmem:[%s3678_s2 + $0x10] sm:$0xff]  }
  0x35   : > { %2719 = vmatprep.subr.bf16.mxu0 %v3233_v1  ;;  %2715 = vmatprep.mubr.msk.bf16.mxu1 %vm3234_vm0, %v3233_v1  ;;  %v3005_v5 = vld [vmem:[%s3677_s1] sm:$0xff]   ;;  %v3013_v21 = vld [vmem:[%s3678_s2 + $0x28] sm:$0xff]   ;;  %v3015_v28 = vld [vmem:[%s3678_s2 + $0x38] sm:$0xff]  }
  0x36   : > { %v3007_v7 = vld [vmem:[%s3677_s1] sm:$0xff]   ;;  %2712 = vmatpush3.bf16.msra.mxu1 %v3009_v9  ;;  %v3016_v32 = vld [vmem:[%s3678_s2 + $0x30] sm:$0xff]  }
  0x37   : > { %2708 = vmatmul.mubr.msk.bf16.vlgmr.msra.gmra.mxu0 %vm356_vm1, %v3002_v2  ;;  %2713 = vmatprep.subr.bf16.mxu1 %v3233_v1  ;;  %v3010_v10 = vld [vmem:[%s3678_s2] sm:$0xff]  }
  0x38   : > { %2720 = vmatpush3.bf16.msra.mxu0 %v3003_v3  ;;  %2721 = vmatprep.mubr.msk.bf16.mxu0 %vm3234_vm0, %v3233_v1  ;;  %v3014_v25 = vld [vmem:[%s3678_s2 + $0x20] sm:$0xff]  }
  0x39   : > { %2733 = vmatprep.subr.bf16.mxu0 %v3233_v1  ;;  %v2373_v37 = vld [vmem:[%s3679_s3] ss:$0 sm:$0xff]  ;;  %v2389_v44 = vld [vmem:[%s3679_s3 + $0x1] ss:$0 sm:$0xff]  ;;  %v2407_v51 = vld [vmem:[%s3679_s3 + $0x2] ss:$0 sm:$0xff] }
  0x3a   : > { %2714 = vmatpush3.bf16.msra.mxu1 %v3010_v10  ;;  %v2425_v61 = vld [vmem:[%s3679_s3 + $0x3] ss:$0 sm:$0xff] }
  0x3b   : > { %2725 = vmatprep.subr.bf16.mxu1 %v3233_v1 }
  0x3f   : > { %2722 = vmatmul.mubr.msk.bf16.vlgmr.msra.gmra.mxu0 %vm356_vm1, %v3004_v4 }
  0x40   : > { %2734 = vmatpush3.bf16.msra.mxu0 %v3005_v5  ;;  %2735 = vmatprep.mubr.msk.bf16.mxu0 %vm3234_vm0, %v3233_v1 }
  0x41   : > { %2747 = vmatprep.subr.bf16.mxu0 %v3233_v1 }
  0x47   : > { %2736 = vmatmul.mubr.msk.bf16.vlgmr.msra.gmra.mxu0 %vm356_vm1, %v3006_v6 }
  0x48   : > { %2748 = vmatpush3.bf16.msra.mxu0 %v3007_v7  ;;  %2749 = vmatprep.mubr.msk.bf16.mxu0 %vm3234_vm0, %v3233_v1 }
  0x4f   : > { %2750 = vmatmul.mubr.msk.bf16.vlgmr.msra.gmra.mxu0 %vm356_vm1, %v3008_v8 }
  0xf7   : > { %v394_v11 = vpop.f32.mrf.mxu0 }
  0xf9   : > { %v2709_v12 = vpop.f32.mrf.mxu0 }
  0xfb   : > { %v397_v13 = vpop.f32.mrf.mxu0 }
  0xfc   : > { %v401_v15 = vpack.c.bf16 %v397_v13, %v394_v11 }
  0xfd   : > { %v2710_v16 = vpop.f32.mrf.mxu0 }
  0xfe   : > { %2716 = vmatmul.mubr.msk.bf16.vlgmr.msra.gmra.mxu1 %vm425_vm2, %v401_v15 }
  0xff   : > { %v539_v17 = vpop.f32.mrf.mxu0  ;;  %2726 = vmatpush3.bf16.msra.mxu1 %v3011_v14  ;;  %2729 = vmatprep.mubr.msk.bf16.mxu1 %vm3234_vm0, %v3233_v1 }
 0x100   : > { %2727 = vmatprep.subr.bf16.mxu1 %v3233_v1 }
 0x101   : > { %v2723_v19 = vpop.f32.mrf.mxu0 }
 0x103   : > { %v542_v20 = vpop.f32.mrf.mxu0  ;;  %2728 = vmatpush3.bf16.msra.mxu1 %v3012_v18 }
 0x104   : > { %v546_v22 = vpack.c.bf16 %v542_v20, %v539_v17  ;;  %2739 = vmatprep.subr.bf16.mxu1 %v3233_v1 }
 0x105   : > { %v2724_v23 = vpop.f32.mrf.mxu0 }
 0x106   : > { %2730 = vmatmul.mubr.msk.bf16.vlgmr.msra.gmra.mxu1 %vm425_vm2, %v546_v22 }
 0x107   : > { %v684_v24 = vpop.f32.mrf.mxu0  ;;  %2740 = vmatpush3.bf16.msra.mxu1 %v3013_v21  ;;  %2743 = vmatprep.mubr.msk.bf16.mxu1 %vm3234_vm0, %v3233_v1 }
 0x108   : > { %2741 = vmatprep.subr.bf16.mxu1 %v3233_v1 }
 0x109   : > { %v2737_v26 = vpop.f32.mrf.mxu0 }
 0x10b   : > { %v687_v27 = vpop.f32.mrf.mxu0  ;;  %2742 = vmatpush3.bf16.msra.mxu1 %v3014_v25 }
 0x10c   : > { %v691_v29 = vpack.c.bf16 %v687_v27, %v684_v24  ;;  %2753 = vmatprep.subr.bf16.mxu1 %v3233_v1 }
 0x10d   : > { %v2738_v30 = vpop.f32.mrf.mxu0 }
 0x10e   : > { %2744 = vmatmul.mubr.msk.bf16.vlgmr.msra.gmra.mxu1 %vm425_vm2, %v691_v29 }
 0x10f   : > { %v829_v31 = vpop.f32.mrf.mxu0  ;;  %2754 = vmatpush3.bf16.msra.mxu1 %v3015_v28  ;;  %2757 = vmatprep.mubr.msk.bf16.mxu1 %vm3234_vm0, %v3233_v1 }
 0x110   : > { %2755 = vmatprep.subr.bf16.mxu1 %v3233_v1 }
 0x111   : > { %v2751_v33 = vpop.f32.mrf.mxu0 }
 0x113   : > { %v832_v34 = vpop.f32.mrf.mxu0  ;;  %2756 = vmatpush3.bf16.msra.mxu1 %v3016_v32 }
 0x114   : > { %v836_v35 = vpack.c.bf16 %v832_v34, %v829_v31 }
 0x115   : > { %v2752_v36 = vpop.f32.mrf.mxu0 }
 0x116   : > { %2758 = vmatmul.mubr.msk.bf16.vlgmr.msra.gmra.mxu1 %vm425_vm2, %v836_v35 }
 0x1be   : > { %v463_v38 = vpop.f32.mrf.mxu1 }
 0x1bf   : > { %v464_v39 = vadd.f32 %v2373_v37, %v463_v38 }
 0x1c0   : > { %v2717_v40 = vpop.f32.mrf.mxu1 }
 0x1c1   : > { %3017 = vtanh.f32 %v464_v39 }
 0x1c2   : > { %v466_v41 = vpop.f32.mrf.mxu1 }
 0x1c3   : > { %v467_v42 = vadd.f32 %v2373_v37, %v466_v41 }
 0x1c4   : > { %v2718_v43 = vpop.f32.mrf.mxu1 }
 0x1c5   : > { %3019 = vtanh.f32 %v467_v42 }
 0x1c6   : > { %v609_v45 = vpop.f32.mrf.mxu1 }
 0x1c7   : > { %v610_v46 = vadd.f32 %v2389_v44, %v609_v45 }
 0x1c8   : > { %v2731_v47 = vpop.f32.mrf.mxu1 }
 0x1c9   : > { %3021 = vtanh.f32 %v610_v46 }
 0x1ca   : > { %v612_v48 = vpop.f32.mrf.mxu1 }
 0x1cb   : > { %v613_v49 = vadd.f32 %v2389_v44, %v612_v48 }
 0x1cc   : > { %v2732_v50 = vpop.f32.mrf.mxu1 }
 0x1cd   : > { %3023 = vtanh.f32 %v613_v49 }
 0x1ce   : > { %v754_v52 = vpop.f32.mrf.mxu1  ;;  %v3018_v55 = vpop.eup %3017 }
 0x1cf   : > { %v755_v53 = vadd.f32 %v2407_v51, %v754_v52 }
 0x1d0   : > { %v2745_v54 = vpop.f32.mrf.mxu1 }
 0x1d1   : > { %3025 = vtanh.f32 %v755_v53 }
 0x1d2   : > { %v3020_v56 = vpop.eup %3019  ;;  %v757_v57 = vpop.f32.mrf.mxu1 }
 0x1d3   : > { %v2561_v58 = vpack.c.bf16 %v3020_v56, %v3018_v55  ;;  %v758_v59 = vadd.f32 %v2407_v51, %v757_v57 }
 0x1d4   : > { %v2746_v60 = vpop.f32.mrf.mxu1 }
 0x1d5   : > { %2562 = vst [vmem:[#allocation2] sm:$0xff] %v2561_v58   ;;  %3027 = vtanh.f32 %v758_v59 }
 0x1d6   : > { %v899_v62 = vpop.f32.mrf.mxu1  ;;  %v3022_v1 = vpop.eup %3021 }
 0x1d7   : > { %v900_v63 = vadd.f32 %v2425_v61, %v899_v62 }
 0x1d8   : > { %v2759_v0 = vpop.f32.mrf.mxu1 }
 0x1d9   : > { %3029 = vtanh.f32 %v900_v63 }
 0x1da   : > { %v3024_v2 = vpop.eup %3023  ;;  %v902_v3 = vpop.f32.mrf.mxu1 }
 0x1db   : > { %v2566_v4 = vpack.c.bf16 %v3024_v2, %v3022_v1  ;;  %v903_v5 = vadd.f32 %v2425_v61, %v902_v3 }
 0x1dc   : > { %v2760_v6 = vpop.f32.mrf.mxu1 }
 0x1dd   : > { %2598 = vst [vmem:[#allocation2 + $0x8] sm:$0xff] %v2566_v4   ;;  %3031 = vtanh.f32 %v903_v5 }
 0x1de   : > { %v3026_v7 = vpop.eup %3025 }
 0x1e2   : > { %v3028_v8 = vpop.eup %3027 }
 0x1e3   : > { %v2571_v9 = vpack.c.bf16 %v3028_v8, %v3026_v7 }
 0x1e5   : > { %2599 = vst [vmem:[#allocation2 + $0x10] sm:$0xff] %v2571_v9  }
 0x1e6   : > { %v3030_v10 = vpop.eup %3029 }
 0x1ea   : > { %v3032_v11 = vpop.eup %3031 }
 0x1eb   : > { %v2576_v12 = vpack.c.bf16 %v3032_v11, %v3030_v10 }
 0x1ed   : > { %2600 = vst [vmem:[#allocation2 + $0x18] sm:$0xff] %v2576_v12  }
 0x1ee PF: > { %p2433_p3 = scmp.ne.s32.totalorder %s3219_s27, 1 }
 0x1ef   : > { %s3237_s10 = smov (!%p2433_p3), 112   ;;  %s3238_s11 = smov (!%p2433_p3), 96  }
 0x1f0   : > { %924 = sbr.rel (%p2433_p3) target bundleno = 1891 (0x763), region = 68  ;;  %s3239_s12 = smov (!%p2433_p3), 104  }
 0x1f1   : > { %s3240_s27 = smov (!%p2433_p3), 120   ;;  %s3241_s13 = smov (!%p2433_p3), 24  }
 0x1f5   : > { %v3033_v13 = vld [vmem:[#allocation2] sm:$0xff]   ;;  %v3235_v14 = vmov 0.0   ;;  %v3034_v15 = vld [vmem:[#allocation2 + $0x8] sm:$0xff]   ;;  %vm3236_vm3 = vmmov 0   ;;  %vm940_vm4 = vcmask 130048   ;;  %v3037_v18 = vld [vmem:[#allocation3 + $0x38] sm:$0xff]  }
 0x1f6   : > { %2761 = vmatprep.subr.bf16.mxu1 %v3235_v14  ;;  %2787 = vmatprep.subr.bf16.mxu0 %v3235_v14  ;;  %v3035_v16 = vld [vmem:[%s3676_s0] sm:$0xff]   ;;  %v3036_v17 = vld [vmem:[%s3676_s0 + $0x8] sm:$0xff]   ;;  %v3038_v19 = vld [vmem:[#allocation3 + $0x78] sm:$0xff]   ;;  %vm2174_vm5 = vcmask 195712   ;;  %vm2129_vm6 = vcmask 326912   ;;  %vm2218_vm7 = vcmask 261312  }
 0x1f7   : > { %2762 = vmatpush3.bf16.msra.mxu1 %v3033_v13  ;;  %2763 = vmatprep.mubr.msk.bf16.mxu1 %vm3236_vm3, %v3235_v14  ;;  %v3039_v20 = vld [vmem:[#allocation3 + $0x30] sm:$0xff]   ;;  %v3041_v22 = vld [vmem:[#allocation3 + $0x28] sm:$0xff]   ;;  %v3043_v24 = vld [vmem:[#allocation3 + $0x20] sm:$0xff]   ;;  %vm2150_vm8 = vcmask 64512   ;;  %vm2215_vm9 = vcmask 130112   ;;  %vm2271_vm10 = vcmask 1047808  }
 0x1f8   : > { %2788 = vmatpush3.bf16.msra.mxu0 %v3034_v15  ;;  %2789 = vmatprep.mubr.msk.bf16.mxu0 %vm3236_vm3, %v3235_v14  ;;  %v3040_v21 = vld [vmem:[#allocation3 + $0x70] sm:$0xff]   ;;  %v3042_v23 = vld [vmem:[#allocation3 + $0x68] sm:$0xff]   ;;  %v3044_v25 = vld [vmem:[#allocation3 + $0x60] sm:$0xff]  }
 0x1f9   : > { %2767 = vmatprep.subr.bf16.mxu1 %v3235_v14  ;;  %2793 = vmatprep.subr.bf16.mxu0 %v3235_v14  ;;  %v3045_v26 = vld [vmem:[#allocation3 + $0x18] sm:$0xff]   ;;  %v3047_v28 = vld [vmem:[#allocation3 + $0x10] sm:$0xff]   ;;  %v3049_v30 = vld [vmem:[#allocation3 + $0x8] sm:$0xff]  }
 0x1fa   : > { %2764 = vmatmul.mubr.msk.bf16.vlgmr.msra.gmra.mxu1 %vm940_vm4, %v3035_v16  ;;  %v3046_v27 = vld [vmem:[#allocation3 + $0x58] sm:$0xff]   ;;  %v3048_v29 = vld [vmem:[#allocation3 + $0x50] sm:$0xff]   ;;  %v3050_v31 = vld [vmem:[#allocation3 + $0x48] sm:$0xff]  }
 0x1fb   : > { %2790 = vmatmul.mubr.msk.bf16.vlgmr.msra.gmra.mxu0 %vm940_vm4, %v3036_v17  ;;  %2768 = vmatpush3.bf16.msra.mxu1 %v3037_v18  ;;  %v3051_v32 = vld [vmem:[#allocation3] sm:$0xff]   ;;  %v3053_v39 = vld [vmem:[#allocation2 + $0x10] sm:$0xff]   ;;  %v3054_v42 = vld [vmem:[#allocation2 + $0x18] sm:$0xff]  }
 0x1fc   : > { %2794 = vmatpush3.bf16.msra.mxu0 %v3038_v19  ;;  %2769 = vmatprep.subr.bf16.mxu1 %v3235_v14  ;;  %v3052_v33 = vld [vmem:[#allocation3 + $0x40] sm:$0xff]   ;;  %v3055_v46 = vld [vmem:[%s3676_s0 + $0x10] sm:$0xff]   ;;  %v3056_v47 = vld [vmem:[%s3676_s0 + $0x18] sm:$0xff]  }
 0x1fd   : > { %2795 = vmatprep.subr.bf16.mxu0 %v3235_v14  ;;  %2783 = vmatprep.mubr.msk.bf16.mxu1 %vm3236_vm3, %v3235_v14  ;;  %v3057_v48 = vld [vmem:[#allocation3 + $0xb8] sm:$0xff]   ;;  %v3059_v50 = vld [vmem:[#allocation3 + $0xb0] sm:$0xff]   ;;  %v3061_v52 = vld [vmem:[#allocation3 + $0xa8] sm:$0xff]  }
 0x1fe   : > { %2809 = vmatprep.mubr.msk.bf16.mxu0 %vm3236_vm3, %v3235_v14  ;;  %v3058_v49 = vld [vmem:[#allocation3 + $0xf8] sm:$0xff]   ;;  %v3060_v51 = vld [vmem:[#allocation3 + $0xf0] sm:$0xff]   ;;  %v3062_v53 = vld [vmem:[#allocation3 + $0xe8] sm:$0xff]  }
 0x1ff   : > { %2770 = vmatpush3.bf16.msra.mxu1 %v3039_v20  ;;  %v3063_v54 = vld [vmem:[#allocation3 + $0xa0] sm:$0xff]   ;;  %v3065_v56 = vld [vmem:[#allocation3 + $0x98] sm:$0xff]   ;;  %v3067_v58 = vld [vmem:[#allocation3 + $0x90] sm:$0xff]  }
 0x200   : > { %2796 = vmatpush3.bf16.msra.mxu0 %v3040_v21  ;;  %2771 = vmatprep.subr.bf16.mxu1 %v3235_v14  ;;  %v3064_v55 = vld [vmem:[#allocation3 + $0xe0] sm:$0xff]   ;;  %v3066_v57 = vld [vmem:[#allocation3 + $0xd8] sm:$0xff]   ;;  %v3068_v59 = vld [vmem:[#allocation3 + $0xd0] sm:$0xff]  }
 0x201   : > { %2797 = vmatprep.subr.bf16.mxu0 %v3235_v14  ;;  %v3069_v60 = vld [vmem:[#allocation3 + $0x88] sm:$0xff]   ;;  %v3071_v62 = vld [vmem:[#allocation3 + $0x80] sm:$0xff]   ;;  %v3073_v20 = vld [vmem:[#allocation5 + $0x38] sm:$0xff]  }
 0x202   : > { %v3070_v61 = vld [vmem:[#allocation3 + $0xc8] sm:$0xff]   ;;  %v3072_v63 = vld [vmem:[#allocation3 + $0xc0] sm:$0xff]  }
 0x203   : > { %2772 = vmatpush3.bf16.msra.mxu1 %v3041_v22  ;;  %v2437_v0 = vld [vmem:[%s3681_s5] ss:$0 sm:$0xff]  ;;  %v2456_v1 = vld [vmem:[%s3681_s5 + $0x1] ss:$0 sm:$0xff] }
 0x204   : > { %2798 = vmatpush3.bf16.msra.mxu0 %v3042_v23  ;;  %2773 = vmatprep.subr.bf16.mxu1 %v3235_v14  ;;  %v3074_v23 = vld [vmem:[#allocation5 + $0x78] sm:$0xff]  }
 0x205   : > { %2799 = vmatprep.subr.bf16.mxu0 %v3235_v14 }
 0x207   : > { %2774 = vmatpush3.bf16.msra.mxu1 %v3043_v24 }
 0x208   : > { %2800 = vmatpush3.bf16.msra.mxu0 %v3044_v25  ;;  %2775 = vmatprep.subr.bf16.mxu1 %v3235_v14 }
 0x209   : > { %2801 = vmatprep.subr.bf16.mxu0 %v3235_v14 }
 0x20b   : > { %2776 = vmatpush3.bf16.msra.mxu1 %v3045_v26 }
 0x20c   : > { %2802 = vmatpush3.bf16.msra.mxu0 %v3046_v27  ;;  %2777 = vmatprep.subr.bf16.mxu1 %v3235_v14  ;;  %v3075_v27 = vld [vmem:[#allocation5 + $0x30] sm:$0xff]  }
 0x20d   : > { %2803 = vmatprep.subr.bf16.mxu0 %v3235_v14 }
 0x20f   : > { %2778 = vmatpush3.bf16.msra.mxu1 %v3047_v28  ;;  %v3076_v28 = vld [vmem:[#allocation5 + $0x70] sm:$0xff]  }
 0x210   : > { %2804 = vmatpush3.bf16.msra.mxu0 %v3048_v29  ;;  %2779 = vmatprep.subr.bf16.mxu1 %v3235_v14 }
 0x211   : > { %2805 = vmatprep.subr.bf16.mxu0 %v3235_v14 }
 0x213   : > { %2780 = vmatpush3.bf16.msra.mxu1 %v3049_v30 }
 0x214   : > { %2781 = vmatprep.subr.bf16.mxu1 %v3235_v14  ;;  %2806 = vmatpush3.bf16.msra.mxu0 %v3050_v31 }
 0x215   : > { %2807 = vmatprep.subr.bf16.mxu0 %v3235_v14 }
 0x217   : > { %2782 = vmatpush3.bf16.msra.mxu1 %v3051_v32  ;;  %v3077_v32 = vld [vmem:[#allocation5 + $0x28] sm:$0xff]  }
 0x218   : > { %2808 = vmatpush3.bf16.msra.mxu0 %v3052_v33  ;;  %2813 = vmatprep.subr.bf16.mxu1 %v3235_v14 }
 0x219   : > { %2839 = vmatprep.subr.bf16.mxu0 %v3235_v14 }
 0x2ba   : > { %v978_v34 = vpop.f32.mrf.mxu1 }
 0x2bb   : > { %v1169_v35 = vpop.f32.mrf.mxu0 }
 0x2bc   : > { %v2765_v36 = vpop.f32.mrf.mxu1 }
 0x2bd   : > { %v2791_v37 = vpop.f32.mrf.mxu0 }
 0x2be   : > { %v981_v38 = vpop.f32.mrf.mxu1  ;;  %v3079_v37 = vld [vmem:[#allocation5 + $0x20] sm:$0xff]  }
 0x2bf   : > { %v985_v40 = vpack.c.bf16 %v981_v38, %v978_v34  ;;  %v1172_v41 = vpop.f32.mrf.mxu0  ;;  %v3078_v34 = vld [vmem:[#allocation5 + $0x68] sm:$0xff]   ;;  %v3080_v38 = vld [vmem:[#allocation5 + $0x60] sm:$0xff]  }
 0x2c0   : > { %v1176_v43 = vpack.c.bf16 %v1172_v41, %v1169_v35  ;;  %v2766_v44 = vpop.f32.mrf.mxu1  ;;  %v3083_v41 = vld [vmem:[#allocation5 + $0x10] sm:$0xff]  }
 0x2c1   : > { %v2792_v45 = vpop.f32.mrf.mxu0  ;;  %2784 = vmatmul.mubr.bf16.vlgmr.msra.gmra.mxu1 %v985_v40  ;;  %v3082_v40 = vld [vmem:[#allocation5 + $0x58] sm:$0xff]   ;;  %v3086_v44 = vld [vmem:[#allocation5 + $0x48] sm:$0xff]  }
 0x2c2   : > { %2810 = vmatmul.mubr.bf16.vlgmr.msra.gmra.mxu0 %v1176_v43  ;;  %2814 = vmatpush3.bf16.msra.mxu1 %v3053_v39  ;;  %v3081_v39 = vld [vmem:[#allocation5 + $0x18] sm:$0xff]   ;;  %v3085_v43 = vld [vmem:[#allocation5 + $0x8] sm:$0xff]   ;;  %v3087_v45 = vld [vmem:[#allocation5] sm:$0xff]  }
 0x2c3   : > { %2840 = vmatpush3.bf16.msra.mxu0 %v3054_v42  ;;  %2815 = vmatprep.mubr.msk.bf16.mxu1 %vm3236_vm3, %v3235_v14  ;;  %v3084_v42 = vld [vmem:[#allocation5 + $0x50] sm:$0xff]  }
 0x2c4   : > { %2841 = vmatprep.mubr.msk.bf16.mxu0 %vm3236_vm3, %v3235_v14  ;;  %2819 = vmatprep.subr.bf16.mxu1 %v3235_v14 }
 0x2c5   : > { %2845 = vmatprep.subr.bf16.mxu0 %v3235_v14 }
 0x2c9   : > { %2816 = vmatmul.mubr.msk.bf16.vlgmr.msra.gmra.mxu1 %vm940_vm4, %v3055_v46  ;;  %v3088_v46 = vld [vmem:[#allocation5 + $0x40] sm:$0xff]  }
 0x2ca   : > { %2842 = vmatmul.mubr.msk.bf16.vlgmr.msra.gmra.mxu0 %vm940_vm4, %v3056_v47  ;;  %2820 = vmatpush3.bf16.msra.mxu1 %v3057_v48  ;;  %v3089_v47 = vld [vmem:[#allocation5 + $0xb8] sm:$0xff]  }
 0x2cb   : > { %2846 = vmatpush3.bf16.msra.mxu0 %v3058_v49  ;;  %2821 = vmatprep.subr.bf16.mxu1 %v3235_v14  ;;  %v3090_v48 = vld [vmem:[#allocation5 + $0xf8] sm:$0xff]   ;;  %v3091_v49 = vld [vmem:[#allocation5 + $0xb0] sm:$0xff]  }
 0x2cc   : > { %2847 = vmatprep.subr.bf16.mxu0 %v3235_v14  ;;  %2835 = vmatprep.mubr.msk.bf16.mxu1 %vm3236_vm3, %v3235_v14 }
 0x2cd   : > { %2861 = vmatprep.mubr.msk.bf16.mxu0 %vm3236_vm3, %v3235_v14 }
 0x2ce   : > { %2822 = vmatpush3.bf16.msra.mxu1 %v3059_v50  ;;  %v3092_v50 = vld [vmem:[#allocation5 + $0xf0] sm:$0xff]  }
 0x2cf   : > { %2848 = vmatpush3.bf16.msra.mxu0 %v3060_v51  ;;  %2823 = vmatprep.subr.bf16.mxu1 %v3235_v14  ;;  %v3093_v51 = vld [vmem:[#allocation5 + $0xa8] sm:$0xff]  }
 0x2d0   : > { %2849 = vmatprep.subr.bf16.mxu0 %v3235_v14 }
 0x2d2   : > { %2824 = vmatpush3.bf16.msra.mxu1 %v3061_v52  ;;  %v3094_v52 = vld [vmem:[#allocation5 + $0xe8] sm:$0xff]  }
 0x2d3   : > { %2850 = vmatpush3.bf16.msra.mxu0 %v3062_v53  ;;  %2825 = vmatprep.subr.bf16.mxu1 %v3235_v14  ;;  %v3095_v53 = vld [vmem:[#allocation5 + $0xa0] sm:$0xff]  }
 0x2d4   : > { %2851 = vmatprep.subr.bf16.mxu0 %v3235_v14 }
 0x2d6   : > { %2826 = vmatpush3.bf16.msra.mxu1 %v3063_v54  ;;  %v3096_v54 = vld [vmem:[#allocation5 + $0xe0] sm:$0xff]  }
 0x2d7   : > { %2852 = vmatpush3.bf16.msra.mxu0 %v3064_v55  ;;  %2827 = vmatprep.subr.bf16.mxu1 %v3235_v14  ;;  %v3097_v55 = vld [vmem:[#allocation5 + $0x98] sm:$0xff]  }
 0x2d8   : > { %2853 = vmatprep.subr.bf16.mxu0 %v3235_v14 }
 0x2da   : > { %2828 = vmatpush3.bf16.msra.mxu1 %v3065_v56  ;;  %v3098_v56 = vld [vmem:[#allocation5 + $0xd8] sm:$0xff]  }
 0x2db   : > { %2854 = vmatpush3.bf16.msra.mxu0 %v3066_v57  ;;  %2829 = vmatprep.subr.bf16.mxu1 %v3235_v14  ;;  %v3099_v57 = vld [vmem:[#allocation5 + $0x90] sm:$0xff]  }
 0x2dc   : > { %2855 = vmatprep.subr.bf16.mxu0 %v3235_v14 }
 0x2de   : > { %2830 = vmatpush3.bf16.msra.mxu1 %v3067_v58  ;;  %v3100_v58 = vld [vmem:[#allocation5 + $0xd0] sm:$0xff]  }
 0x2df   : > { %2856 = vmatpush3.bf16.msra.mxu0 %v3068_v59  ;;  %2831 = vmatprep.subr.bf16.mxu1 %v3235_v14  ;;  %v3101_v59 = vld [vmem:[#allocation5 + $0x88] sm:$0xff]  }
 0x2e0   : > { %2857 = vmatprep.subr.bf16.mxu0 %v3235_v14 }
 0x2e2   : > { %2832 = vmatpush3.bf16.msra.mxu1 %v3069_v60  ;;  %v3102_v60 = vld [vmem:[#allocation5 + $0xc8] sm:$0xff]  }
 0x2e3   : > { %2858 = vmatpush3.bf16.msra.mxu0 %v3070_v61  ;;  %2833 = vmatprep.subr.bf16.mxu1 %v3235_v14  ;;  %v3103_v61 = vld [vmem:[#allocation5 + $0x80] sm:$0xff]  }
 0x2e4   : > { %2859 = vmatprep.subr.bf16.mxu0 %v3235_v14 }
 0x2e6   : > { %2834 = vmatpush3.bf16.msra.mxu1 %v3071_v62  ;;  %v3104_v62 = vld [vmem:[#allocation5 + $0xc0] sm:$0xff]  }
 0x2e7   : > { %2860 = vmatpush3.bf16.msra.mxu0 %v3072_v63  ;;  %2865 = vmatprep.subr.bf16.mxu1 %v3235_v14  ;;  %v2475_v63 = vld [vmem:[%s3681_s5 + $0x2] ss:$0 sm:$0xff] }
 0x2e8   : > { %2885 = vmatprep.subr.bf16.mxu0 %v3235_v14 }
 0x381   : > { %v1091_v2 = vpop.f32.mrf.mxu1 }
 0x382   : > { %v1092_v3 = vadd.f32 %v2437_v0, %v1091_v2  ;;  %v1284_v4 = vpop.f32.mrf.mxu0 }
 0x383   : > { %v1285_v5 = vadd.f32 %v2456_v1, %v1284_v4  ;;  %v2785_v6 = vpop.f32.mrf.mxu1 }
 0x384   : > { %v2811_v7 = vpop.f32.mrf.mxu0  ;;  %3105 = vtanh.f32 %v1092_v3 }
 0x385   : > { %v1094_v8 = vpop.f32.mrf.mxu1  ;;  %3107 = vtanh.f32 %v1285_v5 }
 0x386   : > { %v1095_v9 = vadd.f32 %v2437_v0, %v1094_v8  ;;  %v1287_v10 = vpop.f32.mrf.mxu0  ;;  %v2494_v0 = vld [vmem:[%s3681_s5 + $0x3] ss:$0 sm:$0xff] }
 0x387   : > { %v1288_v11 = vadd.f32 %v2456_v1, %v1287_v10  ;;  %v2786_v12 = vpop.f32.mrf.mxu1 }
 0x388   : > { %3109 = vtanh.f32 %v1095_v9  ;;  %v2812_v13 = vpop.f32.mrf.mxu0 }
 0x389   : > { %3111 = vtanh.f32 %v1288_v11  ;;  %v1361_v15 = vpop.f32.mrf.mxu1 }
 0x38a   : > { %v1553_v16 = vpop.f32.mrf.mxu0 }
 0x38b   : > { %v2817_v17 = vpop.f32.mrf.mxu1 }
 0x38c   : > { %v2843_v18 = vpop.f32.mrf.mxu0 }
 0x38d   : > { %v1364_v19 = vpop.f32.mrf.mxu1 }
 0x38e   : > { %v1368_v21 = vpack.c.bf16 %v1364_v19, %v1361_v15  ;;  %v1556_v22 = vpop.f32.mrf.mxu0 }
 0x38f   : > { %v1560_v24 = vpack.c.bf16 %v1556_v22, %v1553_v16  ;;  %v2818_v25 = vpop.f32.mrf.mxu1 }
 0x390   : > { %v2844_v26 = vpop.f32.mrf.mxu0  ;;  %2836 = vmatmul.mubr.bf16.vlgmr.msra.gmra.mxu1 %v1368_v21 }
 0x391   : > { %2862 = vmatmul.mubr.bf16.vlgmr.msra.gmra.mxu0 %v1560_v24  ;;  %2866 = vmatpush3.bf16.msra.mxu1 %v3073_v20  ;;  %v3106_v29 = vpop.eup %3105  ;;  %v2515_v20 = vld [vmem:[%s3683_s7] ss:$0 sm:$0xff] }
 0x392   : > { %2886 = vmatpush3.bf16.msra.mxu0 %v3074_v23  ;;  %2867 = vmatprep.subr.bf16.mxu1 %v3235_v14  ;;  %v3108_v30 = vpop.eup %3107 }
 0x393   : > { %2887 = vmatprep.subr.bf16.mxu0 %v3235_v14  ;;  %2881 = vmatprep.mubr.msk.bf16.mxu1 %vm3236_vm3, %v3235_v14 }
 0x394   : > { %2901 = vmatprep.mubr.msk.bf16.mxu0 %vm3236_vm3, %v3235_v14 }
 0x395   : > { %v3110_v31 = vpop.eup %3109  ;;  %2868 = vmatpush3.bf16.msra.mxu1 %v3075_v27 }
 0x396   : > { %v3112_v33 = vpop.eup %3111  ;;  %2888 = vmatpush3.bf16.msra.mxu0 %v3076_v28  ;;  %2869 = vmatprep.subr.bf16.mxu1 %v3235_v14  ;;  %v1100_v35 = vpack.c.bf16 %v3110_v31, %v3106_v29 }
 0x397   : > { %2889 = vmatprep.subr.bf16.mxu0 %v3235_v14  ;;  %v1293_v36 = vpack.c.bf16 %v3112_v33, %v3108_v30 }
 0x399   : > { %2870 = vmatpush3.bf16.msra.mxu1 %v3077_v32 }
 0x39a   : > { %2890 = vmatpush3.bf16.msra.mxu0 %v3078_v34  ;;  %2871 = vmatprep.subr.bf16.mxu1 %v3235_v14 }
 0x39b   : > { %2891 = vmatprep.subr.bf16.mxu0 %v3235_v14 }
 0x39d   : > { %2872 = vmatpush3.bf16.msra.mxu1 %v3079_v37 }
 0x39e   : > { %2892 = vmatpush3.bf16.msra.mxu0 %v3080_v38  ;;  %2873 = vmatprep.subr.bf16.mxu1 %v3235_v14 }
 0x39f   : > { %2893 = vmatprep.subr.bf16.mxu0 %v3235_v14 }
 0x3a1   : > { %2874 = vmatpush3.bf16.msra.mxu1 %v3081_v39 }
 0x3a2   : > { %2894 = vmatpush3.bf16.msra.mxu0 %v3082_v40  ;;  %2875 = vmatprep.subr.bf16.mxu1 %v3235_v14 }
 0x3a3   : > { %2895 = vmatprep.subr.bf16.mxu0 %v3235_v14 }
 0x3a5   : > { %2876 = vmatpush3.bf16.msra.mxu1 %v3083_v41 }
 0x3a6   : > { %2896 = vmatpush3.bf16.msra.mxu0 %v3084_v42  ;;  %2877 = vmatprep.subr.bf16.mxu1 %v3235_v14 }
 0x3a7   : > { %2897 = vmatprep.subr.bf16.mxu0 %v3235_v14 }
 0x3a9   : > { %2878 = vmatpush3.bf16.msra.mxu1 %v3085_v43 }
 0x3aa   : > { %2898 = vmatpush3.bf16.msra.mxu0 %v3086_v44  ;;  %2879 = vmatprep.subr.bf16.mxu1 %v3235_v14 }
 0x3ab   : > { %2899 = vmatprep.subr.bf16.mxu0 %v3235_v14 }
 0x3ad   : > { %2880 = vmatpush3.bf16.msra.mxu1 %v3087_v45 }
 0x3ae   : > { %2900 = vmatpush3.bf16.msra.mxu0 %v3088_v46  ;;  %2905 = vmatprep.subr.bf16.mxu1 %v3235_v14 }
 0x3af   : > { %2925 = vmatprep.subr.bf16.mxu0 %v3235_v14 }
 0x3b0   : > { %2882 = vmatmul.mubr.bf16.vlgmr.msra.gmra.mxu1 %v1100_v35 }
 0x3b1   : > { %2902 = vmatmul.mubr.bf16.vlgmr.msra.gmra.mxu0 %v1293_v36  ;;  %2906 = vmatpush3.bf16.msra.mxu1 %v3089_v47 }
 0x3b2   : > { %2926 = vmatpush3.bf16.msra.mxu0 %v3090_v48  ;;  %2907 = vmatprep.subr.bf16.mxu1 %v3235_v14 }
 0x3b3   : > { %2927 = vmatprep.subr.bf16.mxu0 %v3235_v14  ;;  %2921 = vmatprep.mubr.msk.bf16.mxu1 %vm3236_vm3, %v3235_v14 }
 0x3b4   : > { %2941 = vmatprep.mubr.msk.bf16.mxu0 %vm3236_vm3, %v3235_v14 }
 0x3b5   : > { %2908 = vmatpush3.bf16.msra.mxu1 %v3091_v49 }
 0x3b6   : > { %2928 = vmatpush3.bf16.msra.mxu0 %v3092_v50  ;;  %2909 = vmatprep.subr.bf16.mxu1 %v3235_v14 }
 0x3b7   : > { %2929 = vmatprep.subr.bf16.mxu0 %v3235_v14 }
 0x3b9   : > { %2910 = vmatpush3.bf16.msra.mxu1 %v3093_v51 }
 0x3ba   : > { %2930 = vmatpush3.bf16.msra.mxu0 %v3094_v52  ;;  %2911 = vmatprep.subr.bf16.mxu1 %v3235_v14 }
 0x3bb   : > { %2931 = vmatprep.subr.bf16.mxu0 %v3235_v14 }
 0x3bd   : > { %2912 = vmatpush3.bf16.msra.mxu1 %v3095_v53 }
 0x3be   : > { %2932 = vmatpush3.bf16.msra.mxu0 %v3096_v54  ;;  %2913 = vmatprep.subr.bf16.mxu1 %v3235_v14 }
 0x3bf   : > { %2933 = vmatprep.subr.bf16.mxu0 %v3235_v14 }
 0x3c1   : > { %2914 = vmatpush3.bf16.msra.mxu1 %v3097_v55 }
 0x3c2   : > { %2934 = vmatpush3.bf16.msra.mxu0 %v3098_v56  ;;  %2915 = vmatprep.subr.bf16.mxu1 %v3235_v14 }
 0x3c3   : > { %2935 = vmatprep.subr.bf16.mxu0 %v3235_v14 }
 0x3c5   : > { %2916 = vmatpush3.bf16.msra.mxu1 %v3099_v57 }
 0x3c6   : > { %2936 = vmatpush3.bf16.msra.mxu0 %v3100_v58  ;;  %2917 = vmatprep.subr.bf16.mxu1 %v3235_v14 }
 0x3c7   : > { %2937 = vmatprep.subr.bf16.mxu0 %v3235_v14 }
 0x3c9   : > { %2918 = vmatpush3.bf16.msra.mxu1 %v3101_v59 }
 0x3ca   : > { %2938 = vmatpush3.bf16.msra.mxu0 %v3102_v60  ;;  %2919 = vmatprep.subr.bf16.mxu1 %v3235_v14 }
 0x3cb   : > { %2939 = vmatprep.subr.bf16.mxu0 %v3235_v14 }
 0x3cd   : > { %2920 = vmatpush3.bf16.msra.mxu1 %v3103_v61 }
 0x3ce   : > { %2940 = vmatpush3.bf16.msra.mxu0 %v3104_v62 }
 0x450   : > { %v1476_v1 = vpop.f32.mrf.mxu1 }
 0x451   : > { %v1477_v2 = vadd.f32 %v2475_v63, %v1476_v1  ;;  %v1668_v3 = vpop.f32.mrf.mxu0 }
 0x452   : > { %v1669_v4 = vadd.f32 %v2494_v0, %v1668_v3  ;;  %v2837_v5 = vpop.f32.mrf.mxu1 }
 0x453   : > { %v2863_v6 = vpop.f32.mrf.mxu0  ;;  %3113 = vtanh.f32 %v1477_v2 }
 0x454   : > { %v1479_v7 = vpop.f32.mrf.mxu1  ;;  %3115 = vtanh.f32 %v1669_v4 }
 0x455   : > { %v1480_v8 = vadd.f32 %v2475_v63, %v1479_v7  ;;  %v1671_v9 = vpop.f32.mrf.mxu0 }
 0x456   : > { %v1672_v10 = vadd.f32 %v2494_v0, %v1671_v9  ;;  %v2838_v11 = vpop.f32.mrf.mxu1 }
 0x457   : > { %3117 = vtanh.f32 %v1480_v8  ;;  %v2864_v12 = vpop.f32.mrf.mxu0 }
 0x458   : > { %3119 = vtanh.f32 %v1672_v10 }
 0x460   : > { %v3114_v13 = vpop.eup %3113 }
 0x461   : > { %v3116_v15 = vpop.eup %3115 }
 0x464   : > { %v3118_v16 = vpop.eup %3117 }
 0x465   : > { %v3120_v17 = vpop.eup %3119  ;;  %v1485_v18 = vpack.c.bf16 %v3118_v16, %v3114_v13 }
 0x466   : > { %v1677_v19 = vpack.c.bf16 %v3120_v17, %v3116_v15 }
 0x467   : > { %2922 = vmatmul.mubr.bf16.vlgmr.msra.gmra.mxu1 %v1485_v18 }
 0x468   : > { %2942 = vmatmul.mubr.bf16.vlgmr.msra.gmra.mxu0 %v1677_v19 }
 0x470   : > { %v1790_v21 = vpop.f32.mrf.mxu1 }
 0x471   : > { %v1803_v22 = vadd.f32 %v2515_v20, %v1790_v21  ;;  %v1904_v23 = vpop.f32.mrf.mxu0 }
 0x472   : > { %v2883_v24 = vpop.f32.mrf.mxu1 }
 0x473   : > { %v1911_v25 = vadd.f32 %v1904_v23, %v1803_v22  ;;  %v2903_v26 = vpop.f32.mrf.mxu0 }
 0x474   : > { %v1793_v27 = vpop.f32.mrf.mxu1 }
 0x475   : > { %v1804_v28 = vadd.f32 %v2515_v20, %v1793_v27  ;;  %v1907_v29 = vpop.f32.mrf.mxu0 }
 0x476   : > { %v2884_v30 = vpop.f32.mrf.mxu1 }
 0x477   : > { %v1912_v31 = vadd.f32 %v1907_v29, %v1804_v28  ;;  %v2904_v32 = vpop.f32.mrf.mxu0 }
 0x527   : > { %v2012_v33 = vpop.f32.mrf.mxu1 }
 0x528   : > { %v2019_v34 = vadd.f32 %v2012_v33, %v1911_v25  ;;  %v2120_v35 = vpop.f32.mrf.mxu0 }
 0x529   : > { %v2923_v36 = vpop.f32.mrf.mxu1 }
 0x52a   : > { %v3573_v37 = vadd.f32 %v2120_v35, %v2019_v34  ;;  %v2943_v38 = vpop.f32.mrf.mxu0 }
 0x52b   : > { %v2015_v39 = vpop.f32.mrf.mxu1 }
 0x52c   : > { %v2020_v40 = vadd.f32 %v2015_v39, %v1912_v31  ;;  %v2123_v41 = vpop.f32.mrf.mxu0  ;;  %v2175_v42 = vsel %vm2174_vm5, %v3573_v37, -inf  ;;  %v2130_v43 = vsel %vm2129_vm6, %v3573_v37, -inf  ;;  %v2219_v50 = vsel %vm2218_vm7, %v3573_v37, -inf }
 0x52d   : > { %2176 = vmax.xlane.f32.xlu1 %v2175_v42  ;;  %2131 = vmax.xlane.f32.xlu0 %v2130_v43  ;;  %v2924_v44 = vpop.f32.mrf.mxu1 }
 0x52e   : > { %v3578_v45 = vadd.f32 %v2123_v41, %v2020_v40  ;;  %v2944_v46 = vpop.f32.mrf.mxu0 }
 0x530   : > { %v2178_v47 = vsel %vm2174_vm5, %v3578_v45, -inf  ;;  %v2133_v48 = vsel %vm2129_vm6, %v3578_v45, -inf  ;;  %v2222_v49 = vsel %vm2218_vm7, %v3578_v45, -inf }
 0x531   : > { %2179 = vmax.xlane.f32.xlu1 %v2178_v47  ;;  %2134 = vmax.xlane.f32.xlu0 %v2133_v48 }
 0x535   : > { %2223 = vmax.xlane.f32.xlu1 %v2222_v49  ;;  %2220 = vmax.xlane.f32.xlu0 %v2219_v50 }
 0x5b6   : > { %v2177_v51 = vpop.xlane.xlu1 %2176  ;;  %v2132_v52 = vpop.xlane.xlu0 %2131 }
 0x5b7   : > { %v3588_v53 = vsub.f32 %v3573_v37, %v2177_v51  ;;  %v3591_v54 = vsub.f32 %v3573_v37, %v2132_v52 }
 0x5b9   : > { %v2183_v55 = vmul.f32 1.442695, %v3588_v53  ;;  %v2138_v56 = vmul.f32 1.442695, %v3591_v54 }
 0x5ba   : > { %v2180_v57 = vpop.xlane.xlu1 %2179  ;;  %v2135_v58 = vpop.xlane.xlu0 %2134 }
 0x5bb   : > { %3121 = vpow2.f32 %v2183_v55  ;;  %v3596_v59 = vsub.f32 %v3578_v45, %v2180_v57  ;;  %v3599_v60 = vsub.f32 %v3578_v45, %v2135_v58 }
 0x5bc   : > { %3123 = vpow2.f32 %v2138_v56 }
 0x5bd   : > { %v2140_v61 = vmul.f32 1.442695, %v3599_v60  ;;  %v2185_v0 = vmul.f32 1.442695, %v3596_v59 }
 0x5be   : > { %v2224_v62 = vpop.xlane.xlu1 %2223  ;;  %v2221_v63 = vpop.xlane.xlu0 %2220 }
 0x5bf   : > { %v3604_v1 = vsub.f32 %v3573_v37, %v2221_v63  ;;  %3125 = vpow2.f32 %v2140_v61  ;;  %v3607_v2 = vsub.f32 %v3578_v45, %v2224_v62 }
 0x5c0   : > { %3127 = vpow2.f32 %v2185_v0 }
 0x5c1   : > { %v2227_v3 = vmul.f32 1.442695, %v3604_v1  ;;  %v2229_v4 = vmul.f32 1.442695, %v3607_v2 }
 0x5c3   : > { %3129 = vpow2.f32 %v2227_v3 }
 0x5c4   : > { %3131 = vpow2.f32 %v2229_v4 }
 0x5c8   : > { %v3122_v5 = vpop.eup %3121 }
 0x5c9   : > { %v3124_v6 = vpop.eup %3123  ;;  %2189 = vrot.lane.b32.xlu1 %v3122_v5, %s3237_s10 }
 0x5ca   : > { %2144 = vrot.lane.b32.xlu0 %v3124_v6, %s3238_s11 }
 0x5cc   : > { %v3126_v7 = vpop.eup %3125 }
 0x5cd   : > { %2146 = vrot.lane.b32.xlu1 %v3126_v7, %s3238_s11  ;;  %v3128_v8 = vpop.eup %3127 }
 0x5d0   : > { %v3130_v9 = vpop.eup %3129 }
 0x5d1   : > { %2191 = vrot.lane.b32.xlu1 %v3128_v8, %s3237_s10  ;;  %2233 = vrot.lane.b32.xlu0 %v3130_v9, %s3239_s12  ;;  %v3132_v10 = vpop.eup %3131 }
 0x5d5   : > { %2235 = vrot.lane.b32.xlu1 %v3132_v10, %s3239_s12 }
 0x63b   : > { %v2190_v11 = vpop.permute.xlu1 %2189 }
 0x63c   : > { %v2145_v12 = vpop.permute.xlu0 %2144  ;;  %v2195_v17 = vsel %vm2150_vm8, %v2190_v11, 0.0 }
 0x63d   : > { %v2151_v13 = vsel %vm2150_vm8, %v2145_v12, 0.0 }
 0x63e   : > { %2152 = vadd.xlane.f32.xlu0 %v2151_v13 }
 0x63f   : > { %v2147_v15 = vpop.permute.xlu1 %2146 }
 0x640   : > { %v2154_v16 = vsel %vm2150_vm8, %v2147_v15, 0.0 }
 0x641   : > { %2155 = vadd.xlane.f32.xlu1 %v2154_v16 }
 0x642   : > { %2196 = vadd.xlane.f32.xlu0 %v2195_v17 }
 0x643   : > { %v2192_v18 = vpop.permute.xlu1 %2191  ;;  %v2234_v20 = vpop.permute.xlu0 %2233 }
 0x644   : > { %v2198_v19 = vsel %vm2150_vm8, %v2192_v18, 0.0  ;;  %v2239_v23 = vsel %vm2150_vm8, %v2234_v20, 0.0 }
 0x646   : > { %2199 = vadd.xlane.f32.xlu0 %v2198_v19 }
 0x647   : > { %v2236_v21 = vpop.permute.xlu1 %2235 }
 0x648   : > { %v2242_v22 = vsel %vm2150_vm8, %v2236_v21, 0.0 }
 0x649   : > { %2243 = vadd.xlane.f32.xlu1 %v2242_v22 }
 0x64a   : > { %2240 = vadd.xlane.f32.xlu0 %v2239_v23 }
 0x6c7   : > { %v2153_v24 = vpop.xlane.xlu0 %2152 }
 0x6c8   : > { %3133 = vlog2.f32 %v2153_v24 }
 0x6ca   : > { %v2156_v25 = vpop.xlane.xlu1 %2155 }
 0x6cb   : > { %v2197_v26 = vpop.xlane.xlu0 %2196  ;;  %3135 = vlog2.f32 %v2156_v25 }
 0x6cc   : > { %3137 = vlog2.f32 %v2197_v26 }
 0x6cf   : > { %v2200_v27 = vpop.xlane.xlu0 %2199 }
 0x6d0   : > { %3139 = vlog2.f32 %v2200_v27 }
 0x6d2   : > { %v2244_v28 = vpop.xlane.xlu1 %2243 }
 0x6d3   : > { %v2241_v29 = vpop.xlane.xlu0 %2240  ;;  %3141 = vlog2.f32 %v2244_v28 }
 0x6d4   : > { %3143 = vlog2.f32 %v2241_v29 }
 0x6d5   : > { %v3134_v30 = vpop.eup %3133 }
 0x6d6   : > { %v2158_v31 = vmul.f32 0.6931472, %v3134_v30 }
 0x6d8   : > { %v2161_v32 = vsub.f32 %v3591_v54, %v2158_v31  ;;  %v3136_v33 = vpop.eup %3135 }
 0x6d9   : > { %v3138_v34 = vpop.eup %3137  ;;  %v2160_v36 = vmul.f32 0.6931472, %v3136_v33 }
 0x6da   : > { %2165 = vrot.lane.b32.xlu0 %v2161_v32, %s3238_s11  ;;  %v2202_v35 = vmul.f32 0.6931472, %v3138_v34 }
 0x6db   : > { %v2162_v42 = vsub.f32 %v3599_v60, %v2160_v36 }
 0x6dc   : > { %v2205_v38 = vsub.f32 %v3588_v53, %v2202_v35 }
 0x6dd   : > { %v3140_v39 = vpop.eup %3139 }
 0x6de   : > { %2209 = vrot.lane.b32.xlu1 %v2205_v38, %s3240_s27  ;;  %v2204_v41 = vmul.f32 0.6931472, %v3140_v39 }
 0x6e0   : > { %v3142_v40 = vpop.eup %3141  ;;  %v2206_v47 = vsub.f32 %v3596_v59, %v2204_v41 }
 0x6e1   : > { %v3144_v43 = vpop.eup %3143  ;;  %v2248_v46 = vmul.f32 0.6931472, %v3142_v40 }
 0x6e2   : > { %v2246_v44 = vmul.f32 0.6931472, %v3144_v43  ;;  %2167 = vrot.lane.b32.xlu1 %v2162_v42, %s3238_s11 }
 0x6e3   : > { %v2250_v49 = vsub.f32 %v3607_v2, %v2248_v46 }
 0x6e4   : > { %v2249_v48 = vsub.f32 %v3604_v1, %v2246_v44 }
 0x6e6   : > { %2211 = vrot.lane.b32.xlu1 %v2206_v47, %s3240_s27  ;;  %2253 = vrot.lane.b32.xlu0 %v2249_v48, %s3240_s27 }
 0x6ea   : > { %2255 = vrot.lane.b32.xlu1 %v2250_v49, %s3240_s27  ;;  %2263 = vrot.lane.b32.xlu0 %v3573_v37, %s3241_s13 }
 0x6ee   : > { %2265 = vrot.lane.b32.xlu1 %v3578_v45, %s3241_s13 }
 0x74c   : > { %v2166_v50 = vpop.permute.xlu0 %2165 }
 0x74d   : > { %2172 = vst.msk [vmem:[%s3684_s8] sm:$0xff] %vm2150_vm8, %v2166_v50 }
 0x750   : > { %v2210_v51 = vpop.permute.xlu1 %2209 }
 0x751   : > { %2216 = vst.msk [vmem:[%s3684_s8] sm:$0xff] %vm2215_vm9, %v2210_v51 }
 0x754   : > { %v2168_v52 = vpop.permute.xlu1 %2167 }
 0x755   : > { %2173 = vst.msk [vmem:[%s3684_s8 + $0x8] sm:$0xff] %vm2150_vm8, %v2168_v52 }
 0x758   : > { %v2212_v37 = vpop.permute.xlu1 %2211  ;;  %v2254_v45 = vpop.permute.xlu0 %2253 }
 0x759   : > { %2217 = vst.msk [vmem:[%s3684_s8 + $0x8] sm:$0xff] %vm2215_vm9, %v2212_v37 }
 0x75a   : > { %2259 = vst.msk [vmem:[%s3684_s8] sm:$0xff] %vm2174_vm5, %v2254_v45 }
 0x75c   : > { %v2256_v53 = vpop.permute.xlu1 %2255  ;;  %v2264_v54 = vpop.permute.xlu0 %2263 }
 0x75d   : > { %2260 = vst.msk [vmem:[%s3684_s8 + $0x8] sm:$0xff] %vm2174_vm5, %v2256_v53 }
 0x75e   : > { %2269 = vst.msk [vmem:[%s3684_s8] sm:$0xff] %vm2218_vm7, %v2264_v54 }
 0x75f   : > { %2272 = vst.msk [vmem:[%s3684_s8] sm:$0xff] %vm2271_vm10, %v3235_v14 }
 0x760   : > { %v2266_v55 = vpop.permute.xlu1 %2265 }
 0x761   : > { %2270 = vst.msk [vmem:[%s3684_s8 + $0x8] sm:$0xff] %vm2218_vm7, %v2266_v55 }
 0x762   : > { %2273 = vst.msk [vmem:[%s3684_s8 + $0x8] sm:$0xff] %vm2271_vm10, %v3235_v14 }
 0x763 PF: > { %s20_s29 = sadd.s32 1, %s3227_s29   ;;  %s3688_s27 = smov %s3223_s28 }
 0x764   : > { %p17_p4 = scmp.ge.s32.totalorder %s20_s29, 4   ;;  %s3689_s28 = smov %s3691_s9 }
 0x766   :  { %19 = sbr.rel (!%p17_p4) target bundleno = 3 (0x3), region = 128 }
 0x76b   :  { %2285 = vsyncpa [#allocation4], 1 }
 0x76c   :  { %2287 = vsyncpa [#allocation4 + $0x1], 1 }
 0x76d   :  { %2288 = vsyncpa [#allocation6], 1 }

</bundles_post_ra>
